<compile_context>
chip_gen: v7x
topology: tpu7x:2x2x1
jax: 0.10.0
libtpu: 0.0.40
codegen_flags: <defaults>
</compile_context>

<pallas_src>
import functools

import jax
import jax.numpy as jnp
from jax.experimental import pallas as pl
from jax.experimental.pallas import tpu as pltpu


def _round_up(v, m):
    return (v + m - 1) // m * m


def _wslab_offsets(n_hidden):
    """Row offsets of the packed weight slab (all blocks 8-sublane aligned)."""
    H = n_hidden
    off_w1 = 0                      # (2H, F)  [W10^T ; W11^T]
    off_w20 = 2 * H                 # (1, H)   W20^T
    off_w21 = off_w20 + 8           # (1, H)   W21^T
    off_b1 = off_w21 + 8            # (H, 1)   b1^T (column)
    off_b2 = off_b1 + _round_up(H, 8)   # (1, 1) b2
    rows = off_b2 + 8
    return off_w1, off_w20, off_w21, off_b1, off_b2, rows


def gnn_qp_kernel(gslab_ref, wslab_ref, abT_ref, a_ref, xp_ref, lamb_ref,
                  z_ref, aug_scr, *, n_nodes, n_feat, n_hidden, n_sel):
    f32 = jnp.float32
    N, F, H, n = n_nodes, n_feat, n_hidden, n_sel

    # ---- unpack packed slabs (static, 8-aligned ref slices) ---------------
    lhat = gslab_ref[0:N, :]                       # (N, N)  scaled Laplacian
    selT = gslab_ref[N:2 * N, 0:n]                 # (N, n)  sel^T (one-hot cols)
    x_t = gslab_ref[2 * N:2 * N + F, :]            # (F, N)  X^T

    o_w1, o_w20, o_w21, o_b1, o_b2, _ = _wslab_offsets(H)
    w1t = wslab_ref[o_w1:o_w1 + 2 * H, 0:F]        # (2H, F) [W10^T ; W11^T]
    w20t = wslab_ref[o_w20:o_w20 + 1, 0:H]         # (1, H)
    w21t = wslab_ref[o_w21:o_w21 + 1, 0:H]         # (1, H)
    b1c = wslab_ref[o_b1:o_b1 + H, 0:1]            # (H, 1)
    b2v = wslab_ref[o_b2:o_b2 + 1, 0:1]            # (1, 1)

    lamb = lamb_ref[0, 0]

    # ---- ChebConv layer 1 (K=2), transposed / MXU-native ------------------
    # h1^T = relu(W10^T X^T + (W11^T X^T) L_hat + b1^T)        (L_hat = L_hat^T)
    xw_t = jnp.dot(w1t, x_t, preferred_element_type=f32)              # (2H, N)
    lxw_t = jnp.dot(xw_t[H:2 * H, :], lhat, preferred_element_type=f32)  # (H, N)
    h1_t = jnp.maximum(xw_t[0:H, :] + lxw_t + b1c, 0.0)               # (H, N)

    # ---- ChebConv layer 2 as a lane-dense (1, N) row, gather at the end ---
    r0 = jnp.dot(w20t, h1_t, preferred_element_type=f32)              # (1, N)
    r1 = jnp.dot(w21t, h1_t, preferred_element_type=f32)              # (1, N)
    r1l = jnp.dot(r1, lhat, preferred_element_type=f32)               # (1, N)
    h2_row = lamb * jnp.maximum(r0 + r1l + b2v, 0.0)                  # (1, N)
    hfold = jnp.dot(h2_row, selT, preferred_element_type=f32) + 1e-5  # (1, n)

    # ---- QP assembly: one dot gives [A^T A ; b^T A], one merged select ----
    aug0 = jnp.dot(abT_ref[...], a_ref[...], preferred_element_type=f32)  # (n+1, n)
    rows = jax.lax.broadcasted_iota(jnp.int32, (n + 1, n), 0)
    cols = jax.lax.broadcasted_iota(jnp.int32, (n + 1, n), 1)
    # top block: Q = A^T A + diag(hfold); bottom row: rhs^T = b^T A + (xp*hf)^T
    aug0 = aug0 + jnp.where(rows == cols, hfold,
                            jnp.where(rows == n, xp_ref[...] * hfold, 0.0))

    # ---- fused SPD solve: column Gauss-Jordan on [Q ; rhs^T] --------------
    # Reducing the top nxn block to I turns the bottom row into
    # rhs^T Q^{-1} = z^T (Q SPD -> no pivoting needed).  aug mirrored into a
    # VMEM scratch so the pivot row is a cheap dynamic sublane load.
    aug_scr[...] = aug0
    col1n = jax.lax.broadcasted_iota(jnp.int32, (1, n), 1)             # hoisted

    def gj_step(k, m):
        rowk = aug_scr[pl.ds(k, 1), :]                                 # (1, n)
        pkk = jnp.sum(jnp.where(col1n == k, rowk, 0.0),
                      axis=1, keepdims=True)                           # (1, 1)
        colk = jnp.sum(jnp.where(cols == k, m, 0.0),
                       axis=1, keepdims=True)                          # (n+1, 1)
        colk = colk * pl.reciprocal(pkk)                               # exact
        new_m = jnp.where(cols == k, colk, m - colk * rowk)
        aug_scr[...] = new_m
        return new_m

    m = jax.lax.fori_loop(0, n, gj_step, aug0, unroll=True)
    z_ref[...] = m[n:n + 1, :]                                         # z^T (1, n)


def pack_static_inputs(x, l_hat, sel, w10, w11, b1, w20, w21, b2):
    """Pack per-graph / per-model constants into two VMEM slabs (done once)."""
    N, F = x.shape
    n = sel.shape[0]
    H = w10.shape[1]
    W = max(F, H)
    assert N % 8 == 0 and n <= N and w11.shape == (F, H)
    gslab = jnp.concatenate([
        l_hat,
        jnp.pad(sel.T, ((0, 0), (0, N - n))),
        x.T,
    ], axis=0).astype(jnp.float32)                                     # (2N+F, N)

    o_w1, o_w20, o_w21, o_b1, o_b2, rows = _wslab_offsets(H)
    wslab = jnp.zeros((rows, W), jnp.float32)
    wslab = wslab.at[o_w1:o_w1 + 2 * H, 0:F].set(
        jnp.concatenate([w10.T, w11.T], axis=0).astype(jnp.float32))
    wslab = wslab.at[o_w20, 0:H].set(jnp.reshape(w20, (H,)).astype(jnp.float32))
    wslab = wslab.at[o_w21, 0:H].set(jnp.reshape(w21, (H,)).astype(jnp.float32))
    wslab = wslab.at[o_b1:o_b1 + H, 0].set(jnp.reshape(b1, (H,)).astype(jnp.float32))
    wslab = wslab.at[o_b2, 0].set(jnp.reshape(b2, ()).astype(jnp.float32))
    return gslab, wslab


@functools.partial(jax.jit, static_argnames=("n_nodes", "n_feat", "n_hidden"))
def gnn_qp_forward(gslab, wslab, A, b, x_prior, lamb, *, n_nodes, n_feat,
                   n_hidden):
    N, F, H = n_nodes, n_feat, n_hidden
    M, n = A.shape

    # per-call data: three tiny VMEM inputs + one SMEM scalar (no slab packing)
    a_f = A.astype(jnp.float32)
    abT = jnp.concatenate([a_f, jnp.reshape(b, (M, 1)).astype(jnp.float32)],
                          axis=1).T                                    # (n+1, M)
    xp_row = jnp.reshape(x_prior, (1, n)).astype(jnp.float32)
    lamb_arr = jnp.reshape(jnp.asarray(lamb, jnp.float32), (1, 1))

    flops = 2 * (2 * H * F * N + H * N * N + 2 * H * N + N * N + N * n
                 + (n + 1) * M * n) + 4 * n * n * (n + 1)
    bytes_accessed = 4 * (gslab.size + wslab.size + abT.size + a_f.size
                          + xp_row.size + n)
    cost = pl.CostEstimate(flops=int(flops), transcendentals=int(n),
                           bytes_accessed=int(bytes_accessed))

    vmem = pl.BlockSpec(memory_space=pltpu.MemorySpace.VMEM)
    smem = pl.BlockSpec(memory_space=pltpu.MemorySpace.SMEM)
    z_row = pl.pallas_call(
        functools.partial(gnn_qp_kernel, n_nodes=N, n_feat=F, n_hidden=H,
                          n_sel=n),
        out_shape=jax.ShapeDtypeStruct((1, n), jnp.float32),
        in_specs=[vmem, vmem, vmem, vmem, vmem, smem],
        out_specs=vmem,
        scratch_shapes=[pltpu.VMEM((n + 1, n), jnp.float32)],
        cost_estimate=cost,
    )(gslab, wslab, abT, a_f, xp_row, lamb_arr)
    return jnp.reshape(z_row, (n, 1))          # matches f.T of the torch module


def build_scaled_laplacian(adj, lamb_max):
    """Dense L_hat = 2*(I - D^-1/2 A D^-1/2)/lambda_max - I  (ChebConv 'sym')."""
    deg = adj.sum(axis=1)
    dinv = jnp.where(deg > 0, 1.0 / jnp.sqrt(jnp.maximum(deg, 1e-12)), 0.0)
    lap = jnp.eye(adj.shape[0], dtype=jnp.float32) - dinv[:, None] * adj * dinv[None, :]
    return (2.0 / lamb_max) * lap - jnp.eye(adj.shape[0], dtype=jnp.float32)


def reference_forward(x, l_hat, w10, w11, b1, w20, w21, b2, sel, A, b, x_prior,
                      lamb):
    lx = l_hat @ x
    h1 = jnp.maximum(x @ w10 + lx @ w11 + b1, 0.0)
    lh1 = l_hat @ h1
    h2 = lamb * jnp.maximum(h1 @ w20 + lh1 @ w21 + b2, 0.0)
    hfold = sel @ h2 + 1e-5
    Q = A.T @ A + jnp.diagflat(hfold)
    rhs = x_prior * hfold + A.T @ b
    return jnp.linalg.solve(Q, rhs)


if __name__ == "__main__":
    key = jax.random.PRNGKey(0)
    N, F, H = 64, 8, 32          # graph nodes, n_features, n_hidden
    n, M = 16, 24                # fold edges (len(feat_ids)), rows of A
    lamb = jnp.float32(0.5)
    lamb_max = 2.0

    ks = jax.random.split(key, 12)
    # synthetic graph: random symmetric adjacency, no self-loops
    r = jax.random.uniform(ks[0], (N, N))
    adj = ((r + r.T) * 0.5 > 0.85).astype(jnp.float32)
    adj = adj * (1.0 - jnp.eye(N, dtype=jnp.float32))
    l_hat = build_scaled_laplacian(adj, lamb_max)

    x = jax.random.normal(ks[1], (N, F), jnp.float32)                 # g.x
    w10 = jax.random.normal(ks[2], (F, H), jnp.float32) * 0.3
    w11 = jax.random.normal(ks[3], (F, H), jnp.float32) * 0.3
    w20 = jax.random.normal(ks[4], (H, 1), jnp.float32) * 0.3
    w21 = jax.random.normal(ks[5], (H, 1), jnp.float32) * 0.3
    b1 = jax.random.normal(ks[10], (1, H), jnp.float32) * 0.1
    b2 = jax.random.normal(ks[11], (1, 1), jnp.float32) * 0.1

    feat_ids = jax.random.choice(ks[6], N, shape=(n,), replace=False)
    sel = jax.nn.one_hot(feat_ids, N, dtype=jnp.float32)              # (n, N)

    A = jax.random.normal(ks[7], (M, n), jnp.float32)
    b = jax.random.normal(ks[8], (M, 1), jnp.float32)
    x_prior = jnp.abs(jax.random.normal(ks[9], (n, 1), jnp.float32))

    gslab, wslab = pack_static_inputs(x, l_hat, sel, w10, w11, b1, w20, w21, b2)

    out = gnn_qp_forward(gslab, wslab, A, b, x_prior, lamb,
                         n_nodes=N, n_feat=F, n_hidden=H)
    out = jax.block_until_ready(out)

    ref = reference_forward(x, l_hat, w10, w11, b1, w20, w21, b2, sel, A, b,
                            x_prior, lamb)
    assert out.shape == (n, 1)
    assert jnp.allclose(out, ref, atol=1e-3, rtol=1e-3), "mismatch vs reference"
    print("KERNEL_OK")
</pallas_src>

<mosaic_0001>
module attributes {stable_mosaic.version = 11 : i64} {
  func.func @gnn_qp_kernel(%arg0: memref<136x64xf32, #tpu.memory_space<vmem>>, %arg1: memref<120x32xf32, #tpu.memory_space<vmem>>, %arg2: memref<17x24xf32, #tpu.memory_space<vmem>>, %arg3: memref<24x16xf32, #tpu.memory_space<vmem>>, %arg4: memref<1x16xf32, #tpu.memory_space<vmem>>, %arg5: memref<1x1xf32, #tpu.memory_space<smem>>, %arg6: memref<1x16xf32, #tpu.memory_space<vmem>>, %arg7: memref<17x16xf32, #tpu.memory_space<vmem>>) attributes {dimension_semantics = [], scalar_prefetch = 0 : i64, scratch_operands = 1 : i64, tpu.core_type = #tpu.core_type<tc>} {
    %c0 = arith.constant 0 : index
    %c0_0 = arith.constant 0 : index
    %0 = vector.load %arg0[%c0, %c0_0] : memref<136x64xf32, #tpu.memory_space<vmem>>, vector<64x64xf32>
    %c64 = arith.constant 64 : index
    %c0_1 = arith.constant 0 : index
    %1 = vector.load %arg0[%c64, %c0_1] : memref<136x64xf32, #tpu.memory_space<vmem>>, vector<64x16xf32>
    %c128 = arith.constant 128 : index
    %c0_2 = arith.constant 0 : index
    %2 = vector.load %arg0[%c128, %c0_2] : memref<136x64xf32, #tpu.memory_space<vmem>>, vector<8x64xf32>
    %c0_3 = arith.constant 0 : index
    %c0_4 = arith.constant 0 : index
    %3 = vector.load %arg1[%c0_3, %c0_4] : memref<120x32xf32, #tpu.memory_space<vmem>>, vector<64x8xf32>
    %c64_5 = arith.constant 64 : index
    %c0_6 = arith.constant 0 : index
    %4 = vector.load %arg1[%c64_5, %c0_6] : memref<120x32xf32, #tpu.memory_space<vmem>>, vector<1x32xf32>
    %c72 = arith.constant 72 : index
    %c0_7 = arith.constant 0 : index
    %5 = vector.load %arg1[%c72, %c0_7] : memref<120x32xf32, #tpu.memory_space<vmem>>, vector<1x32xf32>
    %c80 = arith.constant 80 : index
    %c0_8 = arith.constant 0 : index
    %6 = vector.load %arg1[%c80, %c0_8] : memref<120x32xf32, #tpu.memory_space<vmem>>, vector<32x1xf32>
    %c112 = arith.constant 112 : index
    %c0_9 = arith.constant 0 : index
    %7 = vector.load %arg1[%c112, %c0_9] : memref<120x32xf32, #tpu.memory_space<vmem>>, vector<1x1xf32>
    %c0_10 = arith.constant 0 : index
    %c0_11 = arith.constant 0 : index
    %8 = memref.load %arg5[%c0_10, %c0_11] : memref<1x1xf32, #tpu.memory_space<smem>>
    %cst = arith.constant dense<0.000000e+00> : vector<64x64xf32>
    %9 = tpu.matmul %3, %2, %cst {dimension_numbers = #tpu.dot_dimension_numbers<[1], [0], [0], [1], [0, 0, 1, 1], [], []>} : vector<64x8xf32>, vector<8x64xf32>, vector<64x64xf32> -> vector<64x64xf32>
    %10 = vector.extract_strided_slice %9 {offsets = [32, 0], sizes = [32, 64], strides = [1, 1]} : vector<64x64xf32> to vector<32x64xf32>
    %cst_12 = arith.constant dense<0.000000e+00> : vector<32x64xf32>
    %11 = tpu.matmul %10, %0, %cst_12 {dimension_numbers = #tpu.dot_dimension_numbers<[1], [0], [0], [1], [0, 0, 1, 1], [], []>} : vector<32x64xf32>, vector<64x64xf32>, vector<32x64xf32> -> vector<32x64xf32>
    %12 = vector.extract_strided_slice %9 {offsets = [0, 0], sizes = [32, 64], strides = [1, 1]} : vector<64x64xf32> to vector<32x64xf32>
    %13 = arith.addf %12, %11 : vector<32x64xf32>
    %14 = vector.broadcast %6 : vector<32x1xf32> to vector<32x64xf32>
    %15 = arith.addf %13, %14 : vector<32x64xf32>
    %cst_13 = arith.constant 0.000000e+00 : f32
    %16 = vector.broadcast %cst_13 : f32 to vector<32x64xf32>
    %17 = arith.maximumf %15, %16 : vector<32x64xf32>
    %cst_14 = arith.constant dense<0.000000e+00> : vector<1x64xf32>
    %18 = tpu.matmul %4, %17, %cst_14 {dimension_numbers = #tpu.dot_dimension_numbers<[1], [0], [0], [1], [0, 0, 1, 1], [], []>} : vector<1x32xf32>, vector<32x64xf32>, vector<1x64xf32> -> vector<1x64xf32>
    %cst_15 = arith.constant dense<0.000000e+00> : vector<1x64xf32>
    %19 = tpu.matmul %5, %17, %cst_15 {dimension_numbers = #tpu.dot_dimension_numbers<[1], [0], [0], [1], [0, 0, 1, 1], [], []>} : vector<1x32xf32>, vector<32x64xf32>, vector<1x64xf32> -> vector<1x64xf32>
    %cst_16 = arith.constant dense<0.000000e+00> : vector<1x64xf32>
    %20 = tpu.matmul %19, %0, %cst_16 {dimension_numbers = #tpu.dot_dimension_numbers<[1], [0], [0], [1], [0, 0, 1, 1], [], []>} : vector<1x64xf32>, vector<64x64xf32>, vector<1x64xf32> -> vector<1x64xf32>
    %21 = arith.addf %18, %20 : vector<1x64xf32>
    %22 = vector.broadcast %7 : vector<1x1xf32> to vector<1x64xf32>
    %23 = arith.addf %21, %22 : vector<1x64xf32>
    %cst_17 = arith.constant 0.000000e+00 : f32
    %24 = vector.broadcast %cst_17 : f32 to vector<1x64xf32>
    %25 = arith.maximumf %23, %24 : vector<1x64xf32>
    %26 = vector.broadcast %8 : f32 to vector<1x64xf32>
    %27 = arith.mulf %26, %25 : vector<1x64xf32>
    %cst_18 = arith.constant dense<0.000000e+00> : vector<1x16xf32>
    %28 = tpu.matmul %27, %1, %cst_18 {dimension_numbers = #tpu.dot_dimension_numbers<[1], [0], [0], [1], [0, 0, 1, 1], [], []>} : vector<1x64xf32>, vector<64x16xf32>, vector<1x16xf32> -> vector<1x16xf32>
    %cst_19 = arith.constant 9.99999974E-6 : f32
    %29 = vector.broadcast %cst_19 : f32 to vector<1x16xf32>
    %30 = arith.addf %28, %29 : vector<1x16xf32>
    %c0_20 = arith.constant 0 : index
    %c0_21 = arith.constant 0 : index
    %31 = vector.load %arg2[%c0_20, %c0_21] : memref<17x24xf32, #tpu.memory_space<vmem>>, vector<17x24xf32>
    %c0_22 = arith.constant 0 : index
    %c0_23 = arith.constant 0 : index
    %32 = vector.load %arg3[%c0_22, %c0_23] : memref<24x16xf32, #tpu.memory_space<vmem>>, vector<24x16xf32>
    %cst_24 = arith.constant dense<0.000000e+00> : vector<17x16xf32>
    %33 = tpu.matmul %31, %32, %cst_24 {dimension_numbers = #tpu.dot_dimension_numbers<[1], [0], [0], [1], [0, 0, 1, 1], [], []>} : vector<17x24xf32>, vector<24x16xf32>, vector<17x16xf32> -> vector<17x16xf32>
    %34 = tpu.iota {dimensions = array<i32: 0>} : vector<17x16xi32>
    %35 = tpu.iota {dimensions = array<i32: 1>} : vector<17x16xi32>
    %36 = arith.cmpi eq, %34, %35 : vector<17x16xi32>
    %c16_i32 = arith.constant 16 : i32
    %37 = vector.broadcast %c16_i32 : i32 to vector<17x16xi32>
    %38 = arith.cmpi eq, %34, %37 : vector<17x16xi32>
    %c0_25 = arith.constant 0 : index
    %c0_26 = arith.constant 0 : index
    %39 = vector.load %arg4[%c0_25, %c0_26] : memref<1x16xf32, #tpu.memory_space<vmem>>, vector<1x16xf32>
    %40 = arith.mulf %39, %30 : vector<1x16xf32>
    %cst_27 = arith.constant 0.000000e+00 : f32
    %41 = vector.shape_cast %40 : vector<1x16xf32> to vector<1x16xf32>
    %42 = vector.broadcast %41 : vector<1x16xf32> to vector<17x16xf32>
    %43 = vector.broadcast %cst_27 : f32 to vector<17x16xf32>
    %44 = arith.select %38, %42, %43 : vector<17x16xi1>, vector<17x16xf32>
    %45 = vector.shape_cast %30 : vector<1x16xf32> to vector<1x16xf32>
    %46 = vector.broadcast %45 : vector<1x16xf32> to vector<17x16xf32>
    %47 = arith.select %36, %46, %44 : vector<17x16xi1>, vector<17x16xf32>
    %48 = arith.addf %33, %47 : vector<17x16xf32>
    %c0_28 = arith.constant 0 : index
    %c0_29 = arith.constant 0 : index
    %49 = vector.load %arg7[%c0_28, %c0_29] : memref<17x16xf32, #tpu.memory_space<vmem>>, vector<17x16xf32>
    tpu.vector_store %arg7[%c0_28, %c0_29], %48 {strides = array<i32>} : memref<17x16xf32, #tpu.memory_space<vmem>>, vector<17x16xf32>,
    %50 = tpu.iota {dimensions = array<i32: 1>} : vector<1x16xi32>
    %c0_i32 = arith.constant 0 : i32
    %51 = arith.index_cast %c0_i32 : i32 to index
    %c0_30 = arith.constant 0 : index
    %52 = vector.load %arg7[%51, %c0_30] : memref<17x16xf32, #tpu.memory_space<vmem>>, vector<1x16xf32>
    %53 = vector.broadcast %c0_i32 : i32 to vector<1x16xi32>
    %54 = arith.cmpi eq, %50, %53 : vector<1x16xi32>
    %cst_31 = arith.constant 0.000000e+00 : f32
    %55 = vector.broadcast %cst_31 : f32 to vector<1x16xf32>
    %56 = arith.select %54, %52, %55 : vector<1x16xi1>, vector<1x16xf32>
    %cst_32 = arith.constant dense<0.000000e+00> : vector<1xf32>
    %57 = vector.multi_reduction <add>, %56, %cst_32 [1] : vector<1x16xf32> to vector<1xf32>
    %58 = vector.shape_cast %57 : vector<1xf32> to vector<1x1xf32>
    %59 = vector.broadcast %c0_i32 : i32 to vector<17x16xi32>
    %60 = arith.cmpi eq, %35, %59 : vector<17x16xi32>
    %cst_33 = arith.constant 0.000000e+00 : f32
    %61 = vector.broadcast %cst_33 : f32 to vector<17x16xf32>
    %62 = arith.select %60, %48, %61 : vector<17x16xi1>, vector<17x16xf32>
    %cst_34 = arith.constant dense<0.000000e+00> : vector<17xf32>
    %63 = vector.multi_reduction <add>, %62, %cst_34 [1] : vector<17x16xf32> to vector<17xf32>
    %64 = vector.shape_cast %63 : vector<17xf32> to vector<17x1xf32>
    %65 = tpu.reciprocal %58 : vector<1x1xf32> -> vector<1x1xf32>
    %66 = vector.broadcast %65 : vector<1x1xf32> to vector<17x1xf32>
    %67 = arith.mulf %64, %66 : vector<17x1xf32>
    %68 = vector.broadcast %c0_i32 : i32 to vector<17x16xi32>
    %69 = arith.cmpi eq, %35, %68 : vector<17x16xi32>
    %70 = vector.broadcast %67 : vector<17x1xf32> to vector<17x16xf32>
    %71 = vector.broadcast %52 : vector<1x16xf32> to vector<17x16xf32>
    %72 = arith.mulf %70, %71 : vector<17x16xf32>
    %73 = arith.subf %48, %72 : vector<17x16xf32>
    %74 = vector.shape_cast %67 : vector<17x1xf32> to vector<17x1xf32>
    %75 = vector.broadcast %74 : vector<17x1xf32> to vector<17x16xf32>
    %76 = arith.select %69, %75, %73 : vector<17x16xi1>, vector<17x16xf32>
    %c0_35 = arith.constant 0 : index
    %c0_36 = arith.constant 0 : index
    %77 = vector.load %arg7[%c0_35, %c0_36] : memref<17x16xf32, #tpu.memory_space<vmem>>, vector<17x16xf32>
    tpu.vector_store %arg7[%c0_35, %c0_36], %76 {strides = array<i32>} : memref<17x16xf32, #tpu.memory_space<vmem>>, vector<17x16xf32>,
    %c1_i32 = arith.constant 1 : i32
    %78 = arith.index_cast %c1_i32 : i32 to index
    %c0_37 = arith.constant 0 : index
    %79 = vector.load %arg7[%78, %c0_37] : memref<17x16xf32, #tpu.memory_space<vmem>>, vector<1x16xf32>
    %80 = vector.broadcast %c1_i32 : i32 to vector<1x16xi32>
    %81 = arith.cmpi eq, %50, %80 : vector<1x16xi32>
    %cst_38 = arith.constant 0.000000e+00 : f32
    %82 = vector.broadcast %cst_38 : f32 to vector<1x16xf32>
    %83 = arith.select %81, %79, %82 : vector<1x16xi1>, vector<1x16xf32>
    %cst_39 = arith.constant dense<0.000000e+00> : vector<1xf32>
    %84 = vector.multi_reduction <add>, %83, %cst_39 [1] : vector<1x16xf32> to vector<1xf32>
    %85 = vector.shape_cast %84 : vector<1xf32> to vector<1x1xf32>
    %86 = vector.broadcast %c1_i32 : i32 to vector<17x16xi32>
    %87 = arith.cmpi eq, %35, %86 : vector<17x16xi32>
    %cst_40 = arith.constant 0.000000e+00 : f32
    %88 = vector.broadcast %cst_40 : f32 to vector<17x16xf32>
    %89 = arith.select %87, %76, %88 : vector<17x16xi1>, vector<17x16xf32>
    %cst_41 = arith.constant dense<0.000000e+00> : vector<17xf32>
    %90 = vector.multi_reduction <add>, %89, %cst_41 [1] : vector<17x16xf32> to vector<17xf32>
    %91 = vector.shape_cast %90 : vector<17xf32> to vector<17x1xf32>
    %92 = tpu.reciprocal %85 : vector<1x1xf32> -> vector<1x1xf32>
    %93 = vector.broadcast %92 : vector<1x1xf32> to vector<17x1xf32>
    %94 = arith.mulf %91, %93 : vector<17x1xf32>
    %95 = vector.broadcast %c1_i32 : i32 to vector<17x16xi32>
    %96 = arith.cmpi eq, %35, %95 : vector<17x16xi32>
    %97 = vector.broadcast %94 : vector<17x1xf32> to vector<17x16xf32>
    %98 = vector.broadcast %79 : vector<1x16xf32> to vector<17x16xf32>
    %99 = arith.mulf %97, %98 : vector<17x16xf32>
    %100 = arith.subf %76, %99 : vector<17x16xf32>
    %101 = vector.shape_cast %94 : vector<17x1xf32> to vector<17x1xf32>
    %102 = vector.broadcast %101 : vector<17x1xf32> to vector<17x16xf32>
    %103 = arith.select %96, %102, %100 : vector<17x16xi1>, vector<17x16xf32>
    %c0_42 = arith.constant 0 : index
    %c0_43 = arith.constant 0 : index
    %104 = vector.load %arg7[%c0_42, %c0_43] : memref<17x16xf32, #tpu.memory_space<vmem>>, vector<17x16xf32>
    tpu.vector_store %arg7[%c0_42, %c0_43], %103 {strides = array<i32>} : memref<17x16xf32, #tpu.memory_space<vmem>>, vector<17x16xf32>,
    %c2_i32 = arith.constant 2 : i32
    %105 = arith.index_cast %c2_i32 : i32 to index
    %c0_44 = arith.constant 0 : index
    %106 = vector.load %arg7[%105, %c0_44] : memref<17x16xf32, #tpu.memory_space<vmem>>, vector<1x16xf32>
    %107 = vector.broadcast %c2_i32 : i32 to vector<1x16xi32>
    %108 = arith.cmpi eq, %50, %107 : vector<1x16xi32>
    %cst_45 = arith.constant 0.000000e+00 : f32
    %109 = vector.broadcast %cst_45 : f32 to vector<1x16xf32>
    %110 = arith.select %108, %106, %109 : vector<1x16xi1>, vector<1x16xf32>
    %cst_46 = arith.constant dense<0.000000e+00> : vector<1xf32>
    %111 = vector.multi_reduction <add>, %110, %cst_46 [1] : vector<1x16xf32> to vector<1xf32>
    %112 = vector.shape_cast %111 : vector<1xf32> to vector<1x1xf32>
    %113 = vector.broadcast %c2_i32 : i32 to vector<17x16xi32>
    %114 = arith.cmpi eq, %35, %113 : vector<17x16xi32>
    %cst_47 = arith.constant 0.000000e+00 : f32
    %115 = vector.broadcast %cst_47 : f32 to vector<17x16xf32>
    %116 = arith.select %114, %103, %115 : vector<17x16xi1>, vector<17x16xf32>
    %cst_48 = arith.constant dense<0.000000e+00> : vector<17xf32>
    %117 = vector.multi_reduction <add>, %116, %cst_48 [1] : vector<17x16xf32> to vector<17xf32>
    %118 = vector.shape_cast %117 : vector<17xf32> to vector<17x1xf32>
    %119 = tpu.reciprocal %112 : vector<1x1xf32> -> vector<1x1xf32>
    %120 = vector.broadcast %119 : vector<1x1xf32> to vector<17x1xf32>
    %121 = arith.mulf %118, %120 : vector<17x1xf32>
    %122 = vector.broadcast %c2_i32 : i32 to vector<17x16xi32>
    %123 = arith.cmpi eq, %35, %122 : vector<17x16xi32>
    %124 = vector.broadcast %121 : vector<17x1xf32> to vector<17x16xf32>
    %125 = vector.broadcast %106 : vector<1x16xf32> to vector<17x16xf32>
    %126 = arith.mulf %124, %125 : vector<17x16xf32>
    %127 = arith.subf %103, %126 : vector<17x16xf32>
    %128 = vector.shape_cast %121 : vector<17x1xf32> to vector<17x1xf32>
    %129 = vector.broadcast %128 : vector<17x1xf32> to vector<17x16xf32>
    %130 = arith.select %123, %129, %127 : vector<17x16xi1>, vector<17x16xf32>
    %c0_49 = arith.constant 0 : index
    %c0_50 = arith.constant 0 : index
    %131 = vector.load %arg7[%c0_49, %c0_50] : memref<17x16xf32, #tpu.memory_space<vmem>>, vector<17x16xf32>
    tpu.vector_store %arg7[%c0_49, %c0_50], %130 {strides = array<i32>} : memref<17x16xf32, #tpu.memory_space<vmem>>, vector<17x16xf32>,
    %c3_i32 = arith.constant 3 : i32
    %132 = arith.index_cast %c3_i32 : i32 to index
    %c0_51 = arith.constant 0 : index
    %133 = vector.load %arg7[%132, %c0_51] : memref<17x16xf32, #tpu.memory_space<vmem>>, vector<1x16xf32>
    %134 = vector.broadcast %c3_i32 : i32 to vector<1x16xi32>
    %135 = arith.cmpi eq, %50, %134 : vector<1x16xi32>
    %cst_52 = arith.constant 0.000000e+00 : f32
    %136 = vector.broadcast %cst_52 : f32 to vector<1x16xf32>
    %137 = arith.select %135, %133, %136 : vector<1x16xi1>, vector<1x16xf32>
    %cst_53 = arith.constant dense<0.000000e+00> : vector<1xf32>
    %138 = vector.multi_reduction <add>, %137, %cst_53 [1] : vector<1x16xf32> to vector<1xf32>
    %139 = vector.shape_cast %138 : vector<1xf32> to vector<1x1xf32>
    %140 = vector.broadcast %c3_i32 : i32 to vector<17x16xi32>
    %141 = arith.cmpi eq, %35, %140 : vector<17x16xi32>
    %cst_54 = arith.constant 0.000000e+00 : f32
    %142 = vector.broadcast %cst_54 : f32 to vector<17x16xf32>
    %143 = arith.select %141, %130, %142 : vector<17x16xi1>, vector<17x16xf32>
    %cst_55 = arith.constant dense<0.000000e+00> : vector<17xf32>
    %144 = vector.multi_reduction <add>, %143, %cst_55 [1] : vector<17x16xf32> to vector<17xf32>
    %145 = vector.shape_cast %144 : vector<17xf32> to vector<17x1xf32>
    %146 = tpu.reciprocal %139 : vector<1x1xf32> -> vector<1x1xf32>
    %147 = vector.broadcast %146 : vector<1x1xf32> to vector<17x1xf32>
    %148 = arith.mulf %145, %147 : vector<17x1xf32>
    %149 = vector.broadcast %c3_i32 : i32 to vector<17x16xi32>
    %150 = arith.cmpi eq, %35, %149 : vector<17x16xi32>
    %151 = vector.broadcast %148 : vector<17x1xf32> to vector<17x16xf32>
    %152 = vector.broadcast %133 : vector<1x16xf32> to vector<17x16xf32>
    %153 = arith.mulf %151, %152 : vector<17x16xf32>
    %154 = arith.subf %130, %153 : vector<17x16xf32>
    %155 = vector.shape_cast %148 : vector<17x1xf32> to vector<17x1xf32>
    %156 = vector.broadcast %155 : vector<17x1xf32> to vector<17x16xf32>
    %157 = arith.select %150, %156, %154 : vector<17x16xi1>, vector<17x16xf32>
    %c0_56 = arith.constant 0 : index
    %c0_57 = arith.constant 0 : index
    %158 = vector.load %arg7[%c0_56, %c0_57] : memref<17x16xf32, #tpu.memory_space<vmem>>, vector<17x16xf32>
    tpu.vector_store %arg7[%c0_56, %c0_57], %157 {strides = array<i32>} : memref<17x16xf32, #tpu.memory_space<vmem>>, vector<17x16xf32>,
    %c4_i32 = arith.constant 4 : i32
    %159 = arith.index_cast %c4_i32 : i32 to index
    %c0_58 = arith.constant 0 : index
    %160 = vector.load %arg7[%159, %c0_58] : memref<17x16xf32, #tpu.memory_space<vmem>>, vector<1x16xf32>
    %161 = vector.broadcast %c4_i32 : i32 to vector<1x16xi32>
    %162 = arith.cmpi eq, %50, %161 : vector<1x16xi32>
    %cst_59 = arith.constant 0.000000e+00 : f32
    %163 = vector.broadcast %cst_59 : f32 to vector<1x16xf32>
    %164 = arith.select %162, %160, %163 : vector<1x16xi1>, vector<1x16xf32>
    %cst_60 = arith.constant dense<0.000000e+00> : vector<1xf32>
    %165 = vector.multi_reduction <add>, %164, %cst_60 [1] : vector<1x16xf32> to vector<1xf32>
    %166 = vector.shape_cast %165 : vector<1xf32> to vector<1x1xf32>
    %167 = vector.broadcast %c4_i32 : i32 to vector<17x16xi32>
    %168 = arith.cmpi eq, %35, %167 : vector<17x16xi32>
    %cst_61 = arith.constant 0.000000e+00 : f32
    %169 = vector.broadcast %cst_61 : f32 to vector<17x16xf32>
    %170 = arith.select %168, %157, %169 : vector<17x16xi1>, vector<17x16xf32>
    %cst_62 = arith.constant dense<0.000000e+00> : vector<17xf32>
    %171 = vector.multi_reduction <add>, %170, %cst_62 [1] : vector<17x16xf32> to vector<17xf32>
    %172 = vector.shape_cast %171 : vector<17xf32> to vector<17x1xf32>
    %173 = tpu.reciprocal %166 : vector<1x1xf32> -> vector<1x1xf32>
    %174 = vector.broadcast %173 : vector<1x1xf32> to vector<17x1xf32>
    %175 = arith.mulf %172, %174 : vector<17x1xf32>
    %176 = vector.broadcast %c4_i32 : i32 to vector<17x16xi32>
    %177 = arith.cmpi eq, %35, %176 : vector<17x16xi32>
    %178 = vector.broadcast %175 : vector<17x1xf32> to vector<17x16xf32>
    %179 = vector.broadcast %160 : vector<1x16xf32> to vector<17x16xf32>
    %180 = arith.mulf %178, %179 : vector<17x16xf32>
    %181 = arith.subf %157, %180 : vector<17x16xf32>
    %182 = vector.shape_cast %175 : vector<17x1xf32> to vector<17x1xf32>
    %183 = vector.broadcast %182 : vector<17x1xf32> to vector<17x16xf32>
    %184 = arith.select %177, %183, %181 : vector<17x16xi1>, vector<17x16xf32>
    %c0_63 = arith.constant 0 : index
    %c0_64 = arith.constant 0 : index
    %185 = vector.load %arg7[%c0_63, %c0_64] : memref<17x16xf32, #tpu.memory_space<vmem>>, vector<17x16xf32>
    tpu.vector_store %arg7[%c0_63, %c0_64], %184 {strides = array<i32>} : memref<17x16xf32, #tpu.memory_space<vmem>>, vector<17x16xf32>,
    %c5_i32 = arith.constant 5 : i32
    %186 = arith.index_cast %c5_i32 : i32 to index
    %c0_65 = arith.constant 0 : index
    %187 = vector.load %arg7[%186, %c0_65] : memref<17x16xf32, #tpu.memory_space<vmem>>, vector<1x16xf32>
    %188 = vector.broadcast %c5_i32 : i32 to vector<1x16xi32>
    %189 = arith.cmpi eq, %50, %188 : vector<1x16xi32>
    %cst_66 = arith.constant 0.000000e+00 : f32
    %190 = vector.broadcast %cst_66 : f32 to vector<1x16xf32>
    %191 = arith.select %189, %187, %190 : vector<1x16xi1>, vector<1x16xf32>
    %cst_67 = arith.constant dense<0.000000e+00> : vector<1xf32>
    %192 = vector.multi_reduction <add>, %191, %cst_67 [1] : vector<1x16xf32> to vector<1xf32>
    %193 = vector.shape_cast %192 : vector<1xf32> to vector<1x1xf32>
    %194 = vector.broadcast %c5_i32 : i32 to vector<17x16xi32>
    %195 = arith.cmpi eq, %35, %194 : vector<17x16xi32>
    %cst_68 = arith.constant 0.000000e+00 : f32
    %196 = vector.broadcast %cst_68 : f32 to vector<17x16xf32>
    %197 = arith.select %195, %184, %196 : vector<17x16xi1>, vector<17x16xf32>
    %cst_69 = arith.constant dense<0.000000e+00> : vector<17xf32>
    %198 = vector.multi_reduction <add>, %197, %cst_69 [1] : vector<17x16xf32> to vector<17xf32>
    %199 = vector.shape_cast %198 : vector<17xf32> to vector<17x1xf32>
    %200 = tpu.reciprocal %193 : vector<1x1xf32> -> vector<1x1xf32>
    %201 = vector.broadcast %200 : vector<1x1xf32> to vector<17x1xf32>
    %202 = arith.mulf %199, %201 : vector<17x1xf32>
    %203 = vector.broadcast %c5_i32 : i32 to vector<17x16xi32>
    %204 = arith.cmpi eq, %35, %203 : vector<17x16xi32>
    %205 = vector.broadcast %202 : vector<17x1xf32> to vector<17x16xf32>
    %206 = vector.broadcast %187 : vector<1x16xf32> to vector<17x16xf32>
    %207 = arith.mulf %205, %206 : vector<17x16xf32>
    %208 = arith.subf %184, %207 : vector<17x16xf32>
    %209 = vector.shape_cast %202 : vector<17x1xf32> to vector<17x1xf32>
    %210 = vector.broadcast %209 : vector<17x1xf32> to vector<17x16xf32>
    %211 = arith.select %204, %210, %208 : vector<17x16xi1>, vector<17x16xf32>
    %c0_70 = arith.constant 0 : index
    %c0_71 = arith.constant 0 : index
    %212 = vector.load %arg7[%c0_70, %c0_71] : memref<17x16xf32, #tpu.memory_space<vmem>>, vector<17x16xf32>
    tpu.vector_store %arg7[%c0_70, %c0_71], %211 {strides = array<i32>} : memref<17x16xf32, #tpu.memory_space<vmem>>, vector<17x16xf32>,
    %c6_i32 = arith.constant 6 : i32
    %213 = arith.index_cast %c6_i32 : i32 to index
    %c0_72 = arith.constant 0 : index
    %214 = vector.load %arg7[%213, %c0_72] : memref<17x16xf32, #tpu.memory_space<vmem>>, vector<1x16xf32>
    %215 = vector.broadcast %c6_i32 : i32 to vector<1x16xi32>
    %216 = arith.cmpi eq, %50, %215 : vector<1x16xi32>
    %cst_73 = arith.constant 0.000000e+00 : f32
    %217 = vector.broadcast %cst_73 : f32 to vector<1x16xf32>
    %218 = arith.select %216, %214, %217 : vector<1x16xi1>, vector<1x16xf32>
    %cst_74 = arith.constant dense<0.000000e+00> : vector<1xf32>
    %219 = vector.multi_reduction <add>, %218, %cst_74 [1] : vector<1x16xf32> to vector<1xf32>
    %220 = vector.shape_cast %219 : vector<1xf32> to vector<1x1xf32>
    %221 = vector.broadcast %c6_i32 : i32 to vector<17x16xi32>
    %222 = arith.cmpi eq, %35, %221 : vector<17x16xi32>
    %cst_75 = arith.constant 0.000000e+00 : f32
    %223 = vector.broadcast %cst_75 : f32 to vector<17x16xf32>
    %224 = arith.select %222, %211, %223 : vector<17x16xi1>, vector<17x16xf32>
    %cst_76 = arith.constant dense<0.000000e+00> : vector<17xf32>
    %225 = vector.multi_reduction <add>, %224, %cst_76 [1] : vector<17x16xf32> to vector<17xf32>
    %226 = vector.shape_cast %225 : vector<17xf32> to vector<17x1xf32>
    %227 = tpu.reciprocal %220 : vector<1x1xf32> -> vector<1x1xf32>
    %228 = vector.broadcast %227 : vector<1x1xf32> to vector<17x1xf32>
    %229 = arith.mulf %226, %228 : vector<17x1xf32>
    %230 = vector.broadcast %c6_i32 : i32 to vector<17x16xi32>
    %231 = arith.cmpi eq, %35, %230 : vector<17x16xi32>
    %232 = vector.broadcast %229 : vector<17x1xf32> to vector<17x16xf32>
    %233 = vector.broadcast %214 : vector<1x16xf32> to vector<17x16xf32>
    %234 = arith.mulf %232, %233 : vector<17x16xf32>
    %235 = arith.subf %211, %234 : vector<17x16xf32>
    %236 = vector.shape_cast %229 : vector<17x1xf32> to vector<17x1xf32>
    %237 = vector.broadcast %236 : vector<17x1xf32> to vector<17x16xf32>
    %238 = arith.select %231, %237, %235 : vector<17x16xi1>, vector<17x16xf32>
    %c0_77 = arith.constant 0 : index
    %c0_78 = arith.constant 0 : index
    %239 = vector.load %arg7[%c0_77, %c0_78] : memref<17x16xf32, #tpu.memory_space<vmem>>, vector<17x16xf32>
    tpu.vector_store %arg7[%c0_77, %c0_78], %238 {strides = array<i32>} : memref<17x16xf32, #tpu.memory_space<vmem>>, vector<17x16xf32>,
    %c7_i32 = arith.constant 7 : i32
    %240 = arith.index_cast %c7_i32 : i32 to index
    %c0_79 = arith.constant 0 : index
    %241 = vector.load %arg7[%240, %c0_79] : memref<17x16xf32, #tpu.memory_space<vmem>>, vector<1x16xf32>
    %242 = vector.broadcast %c7_i32 : i32 to vector<1x16xi32>
    %243 = arith.cmpi eq, %50, %242 : vector<1x16xi32>
    %cst_80 = arith.constant 0.000000e+00 : f32
    %244 = vector.broadcast %cst_80 : f32 to vector<1x16xf32>
    %245 = arith.select %243, %241, %244 : vector<1x16xi1>, vector<1x16xf32>
    %cst_81 = arith.constant dense<0.000000e+00> : vector<1xf32>
    %246 = vector.multi_reduction <add>, %245, %cst_81 [1] : vector<1x16xf32> to vector<1xf32>
    %247 = vector.shape_cast %246 : vector<1xf32> to vector<1x1xf32>
    %248 = vector.broadcast %c7_i32 : i32 to vector<17x16xi32>
    %249 = arith.cmpi eq, %35, %248 : vector<17x16xi32>
    %cst_82 = arith.constant 0.000000e+00 : f32
    %250 = vector.broadcast %cst_82 : f32 to vector<17x16xf32>
    %251 = arith.select %249, %238, %250 : vector<17x16xi1>, vector<17x16xf32>
    %cst_83 = arith.constant dense<0.000000e+00> : vector<17xf32>
    %252 = vector.multi_reduction <add>, %251, %cst_83 [1] : vector<17x16xf32> to vector<17xf32>
    %253 = vector.shape_cast %252 : vector<17xf32> to vector<17x1xf32>
    %254 = tpu.reciprocal %247 : vector<1x1xf32> -> vector<1x1xf32>
    %255 = vector.broadcast %254 : vector<1x1xf32> to vector<17x1xf32>
    %256 = arith.mulf %253, %255 : vector<17x1xf32>
    %257 = vector.broadcast %c7_i32 : i32 to vector<17x16xi32>
    %258 = arith.cmpi eq, %35, %257 : vector<17x16xi32>
    %259 = vector.broadcast %256 : vector<17x1xf32> to vector<17x16xf32>
    %260 = vector.broadcast %241 : vector<1x16xf32> to vector<17x16xf32>
    %261 = arith.mulf %259, %260 : vector<17x16xf32>
    %262 = arith.subf %238, %261 : vector<17x16xf32>
    %263 = vector.shape_cast %256 : vector<17x1xf32> to vector<17x1xf32>
    %264 = vector.broadcast %263 : vector<17x1xf32> to vector<17x16xf32>
    %265 = arith.select %258, %264, %262 : vector<17x16xi1>, vector<17x16xf32>
    %c0_84 = arith.constant 0 : index
    %c0_85 = arith.constant 0 : index
    %266 = vector.load %arg7[%c0_84, %c0_85] : memref<17x16xf32, #tpu.memory_space<vmem>>, vector<17x16xf32>
    tpu.vector_store %arg7[%c0_84, %c0_85], %265 {strides = array<i32>} : memref<17x16xf32, #tpu.memory_space<vmem>>, vector<17x16xf32>,
    %c8_i32 = arith.constant 8 : i32
    %267 = arith.index_cast %c8_i32 : i32 to index
    %c0_86 = arith.constant 0 : index
    %268 = vector.load %arg7[%267, %c0_86] : memref<17x16xf32, #tpu.memory_space<vmem>>, vector<1x16xf32>
    %269 = vector.broadcast %c8_i32 : i32 to vector<1x16xi32>
    %270 = arith.cmpi eq, %50, %269 : vector<1x16xi32>
    %cst_87 = arith.constant 0.000000e+00 : f32
    %271 = vector.broadcast %cst_87 : f32 to vector<1x16xf32>
    %272 = arith.select %270, %268, %271 : vector<1x16xi1>, vector<1x16xf32>
    %cst_88 = arith.constant dense<0.000000e+00> : vector<1xf32>
    %273 = vector.multi_reduction <add>, %272, %cst_88 [1] : vector<1x16xf32> to vector<1xf32>
    %274 = vector.shape_cast %273 : vector<1xf32> to vector<1x1xf32>
    %275 = vector.broadcast %c8_i32 : i32 to vector<17x16xi32>
    %276 = arith.cmpi eq, %35, %275 : vector<17x16xi32>
    %cst_89 = arith.constant 0.000000e+00 : f32
    %277 = vector.broadcast %cst_89 : f32 to vector<17x16xf32>
    %278 = arith.select %276, %265, %277 : vector<17x16xi1>, vector<17x16xf32>
    %cst_90 = arith.constant dense<0.000000e+00> : vector<17xf32>
    %279 = vector.multi_reduction <add>, %278, %cst_90 [1] : vector<17x16xf32> to vector<17xf32>
    %280 = vector.shape_cast %279 : vector<17xf32> to vector<17x1xf32>
    %281 = tpu.reciprocal %274 : vector<1x1xf32> -> vector<1x1xf32>
    %282 = vector.broadcast %281 : vector<1x1xf32> to vector<17x1xf32>
    %283 = arith.mulf %280, %282 : vector<17x1xf32>
    %284 = vector.broadcast %c8_i32 : i32 to vector<17x16xi32>
    %285 = arith.cmpi eq, %35, %284 : vector<17x16xi32>
    %286 = vector.broadcast %283 : vector<17x1xf32> to vector<17x16xf32>
    %287 = vector.broadcast %268 : vector<1x16xf32> to vector<17x16xf32>
    %288 = arith.mulf %286, %287 : vector<17x16xf32>
    %289 = arith.subf %265, %288 : vector<17x16xf32>
    %290 = vector.shape_cast %283 : vector<17x1xf32> to vector<17x1xf32>
    %291 = vector.broadcast %290 : vector<17x1xf32> to vector<17x16xf32>
    %292 = arith.select %285, %291, %289 : vector<17x16xi1>, vector<17x16xf32>
    %c0_91 = arith.constant 0 : index
    %c0_92 = arith.constant 0 : index
    %293 = vector.load %arg7[%c0_91, %c0_92] : memref<17x16xf32, #tpu.memory_space<vmem>>, vector<17x16xf32>
    tpu.vector_store %arg7[%c0_91, %c0_92], %292 {strides = array<i32>} : memref<17x16xf32, #tpu.memory_space<vmem>>, vector<17x16xf32>,
    %c9_i32 = arith.constant 9 : i32
    %294 = arith.index_cast %c9_i32 : i32 to index
    %c0_93 = arith.constant 0 : index
    %295 = vector.load %arg7[%294, %c0_93] : memref<17x16xf32, #tpu.memory_space<vmem>>, vector<1x16xf32>
    %296 = vector.broadcast %c9_i32 : i32 to vector<1x16xi32>
    %297 = arith.cmpi eq, %50, %296 : vector<1x16xi32>
    %cst_94 = arith.constant 0.000000e+00 : f32
    %298 = vector.broadcast %cst_94 : f32 to vector<1x16xf32>
    %299 = arith.select %297, %295, %298 : vector<1x16xi1>, vector<1x16xf32>
    %cst_95 = arith.constant dense<0.000000e+00> : vector<1xf32>
    %300 = vector.multi_reduction <add>, %299, %cst_95 [1] : vector<1x16xf32> to vector<1xf32>
    %301 = vector.shape_cast %300 : vector<1xf32> to vector<1x1xf32>
    %302 = vector.broadcast %c9_i32 : i32 to vector<17x16xi32>
    %303 = arith.cmpi eq, %35, %302 : vector<17x16xi32>
    %cst_96 = arith.constant 0.000000e+00 : f32
    %304 = vector.broadcast %cst_96 : f32 to vector<17x16xf32>
    %305 = arith.select %303, %292, %304 : vector<17x16xi1>, vector<17x16xf32>
    %cst_97 = arith.constant dense<0.000000e+00> : vector<17xf32>
    %306 = vector.multi_reduction <add>, %305, %cst_97 [1] : vector<17x16xf32> to vector<17xf32>
    %307 = vector.shape_cast %306 : vector<17xf32> to vector<17x1xf32>
    %308 = tpu.reciprocal %301 : vector<1x1xf32> -> vector<1x1xf32>
    %309 = vector.broadcast %308 : vector<1x1xf32> to vector<17x1xf32>
    %310 = arith.mulf %307, %309 : vector<17x1xf32>
    %311 = vector.broadcast %c9_i32 : i32 to vector<17x16xi32>
    %312 = arith.cmpi eq, %35, %311 : vector<17x16xi32>
    %313 = vector.broadcast %310 : vector<17x1xf32> to vector<17x16xf32>
    %314 = vector.broadcast %295 : vector<1x16xf32> to vector<17x16xf32>
    %315 = arith.mulf %313, %314 : vector<17x16xf32>
    %316 = arith.subf %292, %315 : vector<17x16xf32>
    %317 = vector.shape_cast %310 : vector<17x1xf32> to vector<17x1xf32>
    %318 = vector.broadcast %317 : vector<17x1xf32> to vector<17x16xf32>
    %319 = arith.select %312, %318, %316 : vector<17x16xi1>, vector<17x16xf32>
    %c0_98 = arith.constant 0 : index
    %c0_99 = arith.constant 0 : index
    %320 = vector.load %arg7[%c0_98, %c0_99] : memref<17x16xf32, #tpu.memory_space<vmem>>, vector<17x16xf32>
    tpu.vector_store %arg7[%c0_98, %c0_99], %319 {strides = array<i32>} : memref<17x16xf32, #tpu.memory_space<vmem>>, vector<17x16xf32>,
    %c10_i32 = arith.constant 10 : i32
    %321 = arith.index_cast %c10_i32 : i32 to index
    %c0_100 = arith.constant 0 : index
    %322 = vector.load %arg7[%321, %c0_100] : memref<17x16xf32, #tpu.memory_space<vmem>>, vector<1x16xf32>
    %323 = vector.broadcast %c10_i32 : i32 to vector<1x16xi32>
    %324 = arith.cmpi eq, %50, %323 : vector<1x16xi32>
    %cst_101 = arith.constant 0.000000e+00 : f32
    %325 = vector.broadcast %cst_101 : f32 to vector<1x16xf32>
    %326 = arith.select %324, %322, %325 : vector<1x16xi1>, vector<1x16xf32>
    %cst_102 = arith.constant dense<0.000000e+00> : vector<1xf32>
    %327 = vector.multi_reduction <add>, %326, %cst_102 [1] : vector<1x16xf32> to vector<1xf32>
    %328 = vector.shape_cast %327 : vector<1xf32> to vector<1x1xf32>
    %329 = vector.broadcast %c10_i32 : i32 to vector<17x16xi32>
    %330 = arith.cmpi eq, %35, %329 : vector<17x16xi32>
    %cst_103 = arith.constant 0.000000e+00 : f32
    %331 = vector.broadcast %cst_103 : f32 to vector<17x16xf32>
    %332 = arith.select %330, %319, %331 : vector<17x16xi1>, vector<17x16xf32>
    %cst_104 = arith.constant dense<0.000000e+00> : vector<17xf32>
    %333 = vector.multi_reduction <add>, %332, %cst_104 [1] : vector<17x16xf32> to vector<17xf32>
    %334 = vector.shape_cast %333 : vector<17xf32> to vector<17x1xf32>
    %335 = tpu.reciprocal %328 : vector<1x1xf32> -> vector<1x1xf32>
    %336 = vector.broadcast %335 : vector<1x1xf32> to vector<17x1xf32>
    %337 = arith.mulf %334, %336 : vector<17x1xf32>
    %338 = vector.broadcast %c10_i32 : i32 to vector<17x16xi32>
    %339 = arith.cmpi eq, %35, %338 : vector<17x16xi32>
    %340 = vector.broadcast %337 : vector<17x1xf32> to vector<17x16xf32>
    %341 = vector.broadcast %322 : vector<1x16xf32> to vector<17x16xf32>
    %342 = arith.mulf %340, %341 : vector<17x16xf32>
    %343 = arith.subf %319, %342 : vector<17x16xf32>
    %344 = vector.shape_cast %337 : vector<17x1xf32> to vector<17x1xf32>
    %345 = vector.broadcast %344 : vector<17x1xf32> to vector<17x16xf32>
    %346 = arith.select %339, %345, %343 : vector<17x16xi1>, vector<17x16xf32>
    %c0_105 = arith.constant 0 : index
    %c0_106 = arith.constant 0 : index
    %347 = vector.load %arg7[%c0_105, %c0_106] : memref<17x16xf32, #tpu.memory_space<vmem>>, vector<17x16xf32>
    tpu.vector_store %arg7[%c0_105, %c0_106], %346 {strides = array<i32>} : memref<17x16xf32, #tpu.memory_space<vmem>>, vector<17x16xf32>,
    %c11_i32 = arith.constant 11 : i32
    %348 = arith.index_cast %c11_i32 : i32 to index
    %c0_107 = arith.constant 0 : index
    %349 = vector.load %arg7[%348, %c0_107] : memref<17x16xf32, #tpu.memory_space<vmem>>, vector<1x16xf32>
    %350 = vector.broadcast %c11_i32 : i32 to vector<1x16xi32>
    %351 = arith.cmpi eq, %50, %350 : vector<1x16xi32>
    %cst_108 = arith.constant 0.000000e+00 : f32
    %352 = vector.broadcast %cst_108 : f32 to vector<1x16xf32>
    %353 = arith.select %351, %349, %352 : vector<1x16xi1>, vector<1x16xf32>
    %cst_109 = arith.constant dense<0.000000e+00> : vector<1xf32>
    %354 = vector.multi_reduction <add>, %353, %cst_109 [1] : vector<1x16xf32> to vector<1xf32>
    %355 = vector.shape_cast %354 : vector<1xf32> to vector<1x1xf32>
    %356 = vector.broadcast %c11_i32 : i32 to vector<17x16xi32>
    %357 = arith.cmpi eq, %35, %356 : vector<17x16xi32>
    %cst_110 = arith.constant 0.000000e+00 : f32
    %358 = vector.broadcast %cst_110 : f32 to vector<17x16xf32>
    %359 = arith.select %357, %346, %358 : vector<17x16xi1>, vector<17x16xf32>
    %cst_111 = arith.constant dense<0.000000e+00> : vector<17xf32>
    %360 = vector.multi_reduction <add>, %359, %cst_111 [1] : vector<17x16xf32> to vector<17xf32>
    %361 = vector.shape_cast %360 : vector<17xf32> to vector<17x1xf32>
    %362 = tpu.reciprocal %355 : vector<1x1xf32> -> vector<1x1xf32>
    %363 = vector.broadcast %362 : vector<1x1xf32> to vector<17x1xf32>
    %364 = arith.mulf %361, %363 : vector<17x1xf32>
    %365 = vector.broadcast %c11_i32 : i32 to vector<17x16xi32>
    %366 = arith.cmpi eq, %35, %365 : vector<17x16xi32>
    %367 = vector.broadcast %364 : vector<17x1xf32> to vector<17x16xf32>
    %368 = vector.broadcast %349 : vector<1x16xf32> to vector<17x16xf32>
    %369 = arith.mulf %367, %368 : vector<17x16xf32>
    %370 = arith.subf %346, %369 : vector<17x16xf32>
    %371 = vector.shape_cast %364 : vector<17x1xf32> to vector<17x1xf32>
    %372 = vector.broadcast %371 : vector<17x1xf32> to vector<17x16xf32>
    %373 = arith.select %366, %372, %370 : vector<17x16xi1>, vector<17x16xf32>
    %c0_112 = arith.constant 0 : index
    %c0_113 = arith.constant 0 : index
    %374 = vector.load %arg7[%c0_112, %c0_113] : memref<17x16xf32, #tpu.memory_space<vmem>>, vector<17x16xf32>
    tpu.vector_store %arg7[%c0_112, %c0_113], %373 {strides = array<i32>} : memref<17x16xf32, #tpu.memory_space<vmem>>, vector<17x16xf32>,
    %c12_i32 = arith.constant 12 : i32
    %375 = arith.index_cast %c12_i32 : i32 to index
    %c0_114 = arith.constant 0 : index
    %376 = vector.load %arg7[%375, %c0_114] : memref<17x16xf32, #tpu.memory_space<vmem>>, vector<1x16xf32>
    %377 = vector.broadcast %c12_i32 : i32 to vector<1x16xi32>
    %378 = arith.cmpi eq, %50, %377 : vector<1x16xi32>
    %cst_115 = arith.constant 0.000000e+00 : f32
    %379 = vector.broadcast %cst_115 : f32 to vector<1x16xf32>
    %380 = arith.select %378, %376, %379 : vector<1x16xi1>, vector<1x16xf32>
    %cst_116 = arith.constant dense<0.000000e+00> : vector<1xf32>
    %381 = vector.multi_reduction <add>, %380, %cst_116 [1] : vector<1x16xf32> to vector<1xf32>
    %382 = vector.shape_cast %381 : vector<1xf32> to vector<1x1xf32>
    %383 = vector.broadcast %c12_i32 : i32 to vector<17x16xi32>
    %384 = arith.cmpi eq, %35, %383 : vector<17x16xi32>
    %cst_117 = arith.constant 0.000000e+00 : f32
    %385 = vector.broadcast %cst_117 : f32 to vector<17x16xf32>
    %386 = arith.select %384, %373, %385 : vector<17x16xi1>, vector<17x16xf32>
    %cst_118 = arith.constant dense<0.000000e+00> : vector<17xf32>
    %387 = vector.multi_reduction <add>, %386, %cst_118 [1] : vector<17x16xf32> to vector<17xf32>
    %388 = vector.shape_cast %387 : vector<17xf32> to vector<17x1xf32>
    %389 = tpu.reciprocal %382 : vector<1x1xf32> -> vector<1x1xf32>
    %390 = vector.broadcast %389 : vector<1x1xf32> to vector<17x1xf32>
    %391 = arith.mulf %388, %390 : vector<17x1xf32>
    %392 = vector.broadcast %c12_i32 : i32 to vector<17x16xi32>
    %393 = arith.cmpi eq, %35, %392 : vector<17x16xi32>
    %394 = vector.broadcast %391 : vector<17x1xf32> to vector<17x16xf32>
    %395 = vector.broadcast %376 : vector<1x16xf32> to vector<17x16xf32>
    %396 = arith.mulf %394, %395 : vector<17x16xf32>
    %397 = arith.subf %373, %396 : vector<17x16xf32>
    %398 = vector.shape_cast %391 : vector<17x1xf32> to vector<17x1xf32>
    %399 = vector.broadcast %398 : vector<17x1xf32> to vector<17x16xf32>
    %400 = arith.select %393, %399, %397 : vector<17x16xi1>, vector<17x16xf32>
    %c0_119 = arith.constant 0 : index
    %c0_120 = arith.constant 0 : index
    %401 = vector.load %arg7[%c0_119, %c0_120] : memref<17x16xf32, #tpu.memory_space<vmem>>, vector<17x16xf32>
    tpu.vector_store %arg7[%c0_119, %c0_120], %400 {strides = array<i32>} : memref<17x16xf32, #tpu.memory_space<vmem>>, vector<17x16xf32>,
    %c13_i32 = arith.constant 13 : i32
    %402 = arith.index_cast %c13_i32 : i32 to index
    %c0_121 = arith.constant 0 : index
    %403 = vector.load %arg7[%402, %c0_121] : memref<17x16xf32, #tpu.memory_space<vmem>>, vector<1x16xf32>
    %404 = vector.broadcast %c13_i32 : i32 to vector<1x16xi32>
    %405 = arith.cmpi eq, %50, %404 : vector<1x16xi32>
    %cst_122 = arith.constant 0.000000e+00 : f32
    %406 = vector.broadcast %cst_122 : f32 to vector<1x16xf32>
    %407 = arith.select %405, %403, %406 : vector<1x16xi1>, vector<1x16xf32>
    %cst_123 = arith.constant dense<0.000000e+00> : vector<1xf32>
    %408 = vector.multi_reduction <add>, %407, %cst_123 [1] : vector<1x16xf32> to vector<1xf32>
    %409 = vector.shape_cast %408 : vector<1xf32> to vector<1x1xf32>
    %410 = vector.broadcast %c13_i32 : i32 to vector<17x16xi32>
    %411 = arith.cmpi eq, %35, %410 : vector<17x16xi32>
    %cst_124 = arith.constant 0.000000e+00 : f32
    %412 = vector.broadcast %cst_124 : f32 to vector<17x16xf32>
    %413 = arith.select %411, %400, %412 : vector<17x16xi1>, vector<17x16xf32>
    %cst_125 = arith.constant dense<0.000000e+00> : vector<17xf32>
    %414 = vector.multi_reduction <add>, %413, %cst_125 [1] : vector<17x16xf32> to vector<17xf32>
    %415 = vector.shape_cast %414 : vector<17xf32> to vector<17x1xf32>
    %416 = tpu.reciprocal %409 : vector<1x1xf32> -> vector<1x1xf32>
    %417 = vector.broadcast %416 : vector<1x1xf32> to vector<17x1xf32>
    %418 = arith.mulf %415, %417 : vector<17x1xf32>
    %419 = vector.broadcast %c13_i32 : i32 to vector<17x16xi32>
    %420 = arith.cmpi eq, %35, %419 : vector<17x16xi32>
    %421 = vector.broadcast %418 : vector<17x1xf32> to vector<17x16xf32>
    %422 = vector.broadcast %403 : vector<1x16xf32> to vector<17x16xf32>
    %423 = arith.mulf %421, %422 : vector<17x16xf32>
    %424 = arith.subf %400, %423 : vector<17x16xf32>
    %425 = vector.shape_cast %418 : vector<17x1xf32> to vector<17x1xf32>
    %426 = vector.broadcast %425 : vector<17x1xf32> to vector<17x16xf32>
    %427 = arith.select %420, %426, %424 : vector<17x16xi1>, vector<17x16xf32>
    %c0_126 = arith.constant 0 : index
    %c0_127 = arith.constant 0 : index
    %428 = vector.load %arg7[%c0_126, %c0_127] : memref<17x16xf32, #tpu.memory_space<vmem>>, vector<17x16xf32>
    tpu.vector_store %arg7[%c0_126, %c0_127], %427 {strides = array<i32>} : memref<17x16xf32, #tpu.memory_space<vmem>>, vector<17x16xf32>,
    %c14_i32 = arith.constant 14 : i32
    %429 = arith.index_cast %c14_i32 : i32 to index
    %c0_128 = arith.constant 0 : index
    %430 = vector.load %arg7[%429, %c0_128] : memref<17x16xf32, #tpu.memory_space<vmem>>, vector<1x16xf32>
    %431 = vector.broadcast %c14_i32 : i32 to vector<1x16xi32>
    %432 = arith.cmpi eq, %50, %431 : vector<1x16xi32>
    %cst_129 = arith.constant 0.000000e+00 : f32
    %433 = vector.broadcast %cst_129 : f32 to vector<1x16xf32>
    %434 = arith.select %432, %430, %433 : vector<1x16xi1>, vector<1x16xf32>
    %cst_130 = arith.constant dense<0.000000e+00> : vector<1xf32>
    %435 = vector.multi_reduction <add>, %434, %cst_130 [1] : vector<1x16xf32> to vector<1xf32>
    %436 = vector.shape_cast %435 : vector<1xf32> to vector<1x1xf32>
    %437 = vector.broadcast %c14_i32 : i32 to vector<17x16xi32>
    %438 = arith.cmpi eq, %35, %437 : vector<17x16xi32>
    %cst_131 = arith.constant 0.000000e+00 : f32
    %439 = vector.broadcast %cst_131 : f32 to vector<17x16xf32>
    %440 = arith.select %438, %427, %439 : vector<17x16xi1>, vector<17x16xf32>
    %cst_132 = arith.constant dense<0.000000e+00> : vector<17xf32>
    %441 = vector.multi_reduction <add>, %440, %cst_132 [1] : vector<17x16xf32> to vector<17xf32>
    %442 = vector.shape_cast %441 : vector<17xf32> to vector<17x1xf32>
    %443 = tpu.reciprocal %436 : vector<1x1xf32> -> vector<1x1xf32>
    %444 = vector.broadcast %443 : vector<1x1xf32> to vector<17x1xf32>
    %445 = arith.mulf %442, %444 : vector<17x1xf32>
    %446 = vector.broadcast %c14_i32 : i32 to vector<17x16xi32>
    %447 = arith.cmpi eq, %35, %446 : vector<17x16xi32>
    %448 = vector.broadcast %445 : vector<17x1xf32> to vector<17x16xf32>
    %449 = vector.broadcast %430 : vector<1x16xf32> to vector<17x16xf32>
    %450 = arith.mulf %448, %449 : vector<17x16xf32>
    %451 = arith.subf %427, %450 : vector<17x16xf32>
    %452 = vector.shape_cast %445 : vector<17x1xf32> to vector<17x1xf32>
    %453 = vector.broadcast %452 : vector<17x1xf32> to vector<17x16xf32>
    %454 = arith.select %447, %453, %451 : vector<17x16xi1>, vector<17x16xf32>
    %c0_133 = arith.constant 0 : index
    %c0_134 = arith.constant 0 : index
    %455 = vector.load %arg7[%c0_133, %c0_134] : memref<17x16xf32, #tpu.memory_space<vmem>>, vector<17x16xf32>
    tpu.vector_store %arg7[%c0_133, %c0_134], %454 {strides = array<i32>} : memref<17x16xf32, #tpu.memory_space<vmem>>, vector<17x16xf32>,
    %c15_i32 = arith.constant 15 : i32
    %456 = arith.index_cast %c15_i32 : i32 to index
    %c0_135 = arith.constant 0 : index
    %457 = vector.load %arg7[%456, %c0_135] : memref<17x16xf32, #tpu.memory_space<vmem>>, vector<1x16xf32>
    %458 = vector.broadcast %c15_i32 : i32 to vector<1x16xi32>
    %459 = arith.cmpi eq, %50, %458 : vector<1x16xi32>
    %cst_136 = arith.constant 0.000000e+00 : f32
    %460 = vector.broadcast %cst_136 : f32 to vector<1x16xf32>
    %461 = arith.select %459, %457, %460 : vector<1x16xi1>, vector<1x16xf32>
    %cst_137 = arith.constant dense<0.000000e+00> : vector<1xf32>
    %462 = vector.multi_reduction <add>, %461, %cst_137 [1] : vector<1x16xf32> to vector<1xf32>
    %463 = vector.shape_cast %462 : vector<1xf32> to vector<1x1xf32>
    %464 = vector.broadcast %c15_i32 : i32 to vector<17x16xi32>
    %465 = arith.cmpi eq, %35, %464 : vector<17x16xi32>
    %cst_138 = arith.constant 0.000000e+00 : f32
    %466 = vector.broadcast %cst_138 : f32 to vector<17x16xf32>
    %467 = arith.select %465, %454, %466 : vector<17x16xi1>, vector<17x16xf32>
    %cst_139 = arith.constant dense<0.000000e+00> : vector<17xf32>
    %468 = vector.multi_reduction <add>, %467, %cst_139 [1] : vector<17x16xf32> to vector<17xf32>
    %469 = vector.shape_cast %468 : vector<17xf32> to vector<17x1xf32>
    %470 = tpu.reciprocal %463 : vector<1x1xf32> -> vector<1x1xf32>
    %471 = vector.broadcast %470 : vector<1x1xf32> to vector<17x1xf32>
    %472 = arith.mulf %469, %471 : vector<17x1xf32>
    %473 = vector.broadcast %c15_i32 : i32 to vector<17x16xi32>
    %474 = arith.cmpi eq, %35, %473 : vector<17x16xi32>
    %475 = vector.broadcast %472 : vector<17x1xf32> to vector<17x16xf32>
    %476 = vector.broadcast %457 : vector<1x16xf32> to vector<17x16xf32>
    %477 = arith.mulf %475, %476 : vector<17x16xf32>
    %478 = arith.subf %454, %477 : vector<17x16xf32>
    %479 = vector.shape_cast %472 : vector<17x1xf32> to vector<17x1xf32>
    %480 = vector.broadcast %479 : vector<17x1xf32> to vector<17x16xf32>
    %481 = arith.select %474, %480, %478 : vector<17x16xi1>, vector<17x16xf32>
    %c0_140 = arith.constant 0 : index
    %c0_141 = arith.constant 0 : index
    %482 = vector.load %arg7[%c0_140, %c0_141] : memref<17x16xf32, #tpu.memory_space<vmem>>, vector<17x16xf32>
    tpu.vector_store %arg7[%c0_140, %c0_141], %481 {strides = array<i32>} : memref<17x16xf32, #tpu.memory_space<vmem>>, vector<17x16xf32>,
    %c16_i32_142 = arith.constant 16 : i32
    %483 = vector.extract_strided_slice %481 {offsets = [16, 0], sizes = [1, 16], strides = [1, 1]} : vector<17x16xf32> to vector<1x16xf32>
    %c0_143 = arith.constant 0 : index
    %c0_144 = arith.constant 0 : index
    %484 = vector.load %arg6[%c0_143, %c0_144] : memref<1x16xf32, #tpu.memory_space<vmem>>, vector<1x16xf32>
    tpu.vector_store %arg6[%c0_143, %c0_144], %483 {strides = array<i32>} : memref<1x16xf32, #tpu.memory_space<vmem>>, vector<1x16xf32>,
    return
  }
}

</mosaic_0001>

<bundles_post_ra>
// kernel: gnn_qp_forward.1
= control target key start
LH: loop header
LB: loop body
LE: loop exit
PB: predicated region body
PF: predicated region fallthrough
CT: control target
= control target key end

     0   :  { %vm58_vm0 = vcmask 64512   ;;  %s2443_s0 = inlined_call_operand.vmem [shape: f32[136,64], index: 0, kind: input, shape index: {}]   ;;  %s2444_s1 = inlined_call_operand.vmem [shape: f32[120,32], index: 1, kind: input, shape index: {}]   ;;  %s2445_s2 = inlined_call_operand.vmem [shape: f32[17,24], index: 2, kind: input, shape index: {}]   ;;  %s2446_s3 = inlined_call_operand.vmem [shape: f32[24,16], index: 3, kind: input, shape index: {}]   ;;  %s2447_s4 = inlined_call_operand.vmem [shape: f32[1,16], index: 4, kind: input, shape index: {}]   ;;  %s2448_s5 = inlined_call_operand.<no memory space> [shape: f32[1,1], index: 5, kind: input, shape index: {}]   ;;  %s2449_s6 = inlined_call_operand.hbm [shape: f32[1,16], index: 6, kind: output, shape index: {}]  }
   0x1   :  { %v41_v0 = vld [vmem:[%s2443_s0 + $0x80] sm:$0xff]  ;;  %v43_v2 = vld [vmem:[%s2444_s1 + $0x8] sm:$0xff]  ;;  %v44_v3 = vld [vmem:[%s2444_s1 + $0x10] sm:$0xff] }
   0x2   :  { %v42_v1 = vld [vmem:[%s2444_s1] sm:$0xff]  ;;  %1512 = vmatprep.subr.mxu0 %v41_v0  ;;  %v26_v5 = vld [vmem:[%s2443_s0 + $0x8] sm:$0xff]  ;;  %v27_v6 = vld [vmem:[%s2443_s0 + $0x10] sm:$0xff] }
   0x3   :  { %1514 = vmatprep.mubr.msk.f32.mxu0 %vm58_vm0, %v42_v1  ;;  %1513 = vmatpush3.msra.mxu0 %v41_v0  ;;  %v25_v4 = vld [vmem:[%s2443_s0] sm:$0xff]  ;;  %v45_v7 = vld [vmem:[%s2444_s1 + $0x18] sm:$0xff] }
   0x4   :  { %1515 = vmatmul.mubr.msk.f32.vlgmr.msra.gmra.mrb[0].mxu0 %vm58_vm0, %v43_v2  ;;  %v1812_v8 = vpack.c.bf16 %v26_v5, %v25_v4  ;;  %v28_v9 = vld [vmem:[%s2443_s0 + $0x18] sm:$0xff]  ;;  %v46_v10 = vld [vmem:[%s2444_s1 + $0x20] sm:$0xff] }
   0x5   :  { %1517 = vmatprep.mubr.msk.f32.mxu0 %vm58_vm0, %v44_v3  ;;  %v1820_v11 = vpack.c.bf16 %v28_v9, %v27_v6 }
   0x6   :  { %12 = vsyncpa [#allocation5], 0  ;;  %1624 = vmatprep.subr.bf16.mxu0 %v1812_v8  ;;  %v29_v12 = vld [vmem:[%s2443_s0 + $0x20] sm:$0xff]  ;;  %v30_v13 = vld [vmem:[%s2443_s0 + $0x28] sm:$0xff]  ;;  %v1745_v23 = vmov 0   ;;  %vm188_vm1 = vcmask 523264  }
   0x7   :  { %v47_v14 = vld [vmem:[%s2444_s1 + $0x28] sm:$0xff]  ;;  %1626 = vmatpush3.bf16.msra.mxu0 %v1812_v8  ;;  %v48_v15 = vld [vmem:[%s2444_s1 + $0x30] sm:$0xff]  ;;  %v1839_v16 = vpack.c.bf16 %v30_v13, %v29_v12  ;;  %v32_v18 = vld [vmem:[%s2443_s0 + $0x38] sm:$0xff]  ;;  %1687 = vset.pattern.permute.xlu0 %v1745_v23  ;;  %v1746_v31 = vmov 0.0|0.0   ;;  %vm1747_vm2 = vmmov 0   ;;  %v1748_v32 = vmov 0.0  }
   0x8   :  { %1518 = vmatmul.mubr.msk.f32.gmra.mrb[2].mxu0 %vm58_vm0, %v45_v7  ;;  %1628 = vmatprep.subr.bf16.mxu0 %v1820_v11  ;;  %v31_v17 = vld [vmem:[%s2443_s0 + $0x30] sm:$0xff]  ;;  %v49_v19 = vld [vmem:[%s2444_s1 + $0x38] sm:$0xff]  ;;  %v54_v22 = vld [vmem:[%s2444_s1 + $0x60] sm:$0xff]  ;;  %vm318_vm3 = vcmask 261120   ;;  %vm656_vm4 = vcmask 195584   ;;  %vm746_vm7 = vcmask 130048  }
   0x9   :  { %1520 = vmatprep.mubr.msk.f32.mxu0 %vm58_vm0, %v46_v10  ;;  %v1854_v20 = vpack.c.bf16 %v32_v18, %v31_v17  ;;  %v52_v21 = vld [vmem:[%s2444_s1 + $0x50] sm:$0xff]  ;;  %1688 = vset.pattern.permute.xlu1 %v1745_v23  ;;  %v53_v24 = vld [vmem:[%s2444_s1 + $0x58] sm:$0xff]  ;;  %v55_v25 = vld [vmem:[%s2444_s1 + $0x68] sm:$0xff]  ;;  %v545_v17 = vstv %s2448_s5  ;;  %vm749_vm11 = vcmask 122880  }
   0xa   :  { %292 = vperm.xlu0 %1687, %v52_v21   ;;  %302 = vperm.xlu1 %1688, %v54_v22   ;;  %v56_v26 = vld [vmem:[%s2444_s1 + $0x70] sm:$0x1]  ;;  %v51_v51 = vld [vmem:[%s2444_s1 + $0x48] sm:$0x1]  ;;  %v50_v52 = vld [vmem:[%s2444_s1 + $0x40] sm:$0x1] }
   0xb   :  { %1630 = vmatpush3.bf16.msra.mxu0 %v1820_v11  ;;  %1639 = vmatprep.subr.bf16.mxu1 %v1746_v31  ;;  %v33_v53 = vld [vmem:[%s2443_s0 + $0x40] sm:$0xff]  ;;  %v34_v54 = vld [vmem:[%s2443_s0 + $0x48] sm:$0xff]  ;;  %v35_v56 = vld [vmem:[%s2443_s0 + $0x50] sm:$0xff] }
   0xc   :  { %1521 = vmatmul.mubr.msk.f32.gmra.mrb[4].mxu0 %vm58_vm0, %v47_v14  ;;  %1632 = vmatprep.subr.bf16.mxu0 %v1839_v16  ;;  %v1664_v55 = vpack.c.bf16 %v34_v54, %v33_v53  ;;  %v36_v57 = vld [vmem:[%s2443_s0 + $0x58] sm:$0xff]  ;;  %v37_v62 = vld [vmem:[%s2443_s0 + $0x60] sm:$0xff]  ;;  %v38_v63 = vld [vmem:[%s2443_s0 + $0x68] sm:$0xff] }
   0xd   :  { %1523 = vmatprep.mubr.msk.f32.mxu0 %vm58_vm0, %v48_v15  ;;  %1556 = vmatprep.mubr.msk.f32.mxu1 %vm1747_vm2, %v1748_v32  ;;  %v1667_v60 = vpack.c.bf16 %v36_v57, %v35_v56  ;;  %v1670_v1 = vpack.c.bf16 %v38_v63, %v37_v62  ;;  %v623_v2 = vld [vmem:[%s2446_s3] sm:$0xff]  ;;  %v624_v3 = vld [vmem:[%s2446_s3 + $0x8] sm:$0xff]  ;;  %v39_v5 = vld [vmem:[%s2443_s0 + $0x70] sm:$0xff] }
   0xe   :  { %297 = vperm.xlu0 %1687, %v53_v24   ;;  %307 = vperm.xlu1 %1688, %v55_v25   ;;  %v1676_v4 = vpack.c.bf16 %v624_v3, %v623_v2  ;;  %v40_v6 = vld [vmem:[%s2443_s0 + $0x78] sm:$0xff]  ;;  %v620_v9 = vld [vmem:[%s2445_s2] sm:$0xff]  ;;  %v621_v10 = vld [vmem:[%s2445_s2 + $0x8] sm:$0xff] }
   0xf   :  { %1634 = vmatpush3.bf16.msra.mxu0 %v1839_v16  ;;  %v1673_v7 = vpack.c.bf16 %v40_v6, %v39_v5 }
  0x10   :  { %1524 = vmatmul.mubr.msk.f32.gmra.mrb[6].mxu0 %vm58_vm0, %v49_v19  ;;  %1636 = vmatprep.subr.bf16.mxu0 %v1854_v20 }
  0x12   :  { %540 = vperm.xlu0 %1687, %v56_v26   ;;  %v626_v26 = vlaneseq }
  0x13   :  { %1638 = vmatpush3.bf16.msra.mxu0 %v1854_v20 }
  0x14   :  { %1657 = vmatprep.subr.bf16.mxu0 %v1746_v31 }
  0x89   :  { %v293_v33 = vpop.permute.xlu0 %292  ;;  %v303_v34 = vpop.permute.xlu1 %302 }
  0x8d   :  { %v298_v35 = vpop.permute.xlu0 %297  ;;  %v308_v41 = vpop.permute.xlu1 %307 }
  0x91   :  { %v541_v15 = vpop.permute.xlu0 %540 }
  0xdf   :  { %v1522_v27 = vpop.f32.mrb[4].mxu0 }
  0xe0   :  { %v169_v28 = vpop.f32.mrb[5].mxu0 }
  0xe1   :  { %1542 = vmatprep.mubr.msk.f32.mxu0 %vm188_vm1, %v169_v28  ;;  %v1964_v28 = vand.u32 127, %v626_v26 }
  0xe2   :  { %1543 = vmatmul.mubr.msk.f32.vlgmr.msra.gmra.mrb[0].mxu0 %vm188_vm1, %v1522_v27  ;;  %v627_v27 = vshrl.u32 %v626_v26, 7 }
  0xe3   :  { %v1525_v29 = vpop.f32.mrb[6].mxu0  ;;  %vm752_vm10 = vcmp.eq.s32.totalorder %v1964_v28, 0  ;;  %vm794_vm12 = vcmp.eq.s32.totalorder %v1964_v28, 1  ;;  %vm836_vm13 = vcmp.eq.s32.totalorder %v1964_v28, 2  ;;  %vm878_vm14 = vcmp.eq.s32.totalorder %v1964_v28, 3 }
  0xe4   :  { %v179_v30 = vpop.f32.mrb[7].mxu0  ;;  %vm632_vm5 = vcmp.eq.s32.totalorder %v627_v27, %v1964_v28  ;;  %vm920_vm15 = vcmp.eq.s32.totalorder %v1964_v28, 4  ;;  %vm962_vm0 = vcmp.eq.s32.totalorder %v1964_v28, 5 }
  0xe5   :  { %1545 = vmatprep.mubr.msk.f32.mxu0 %vm188_vm1, %v179_v30  ;;  %v1966_v30 = vsub.s32 0, %v627_v27 }
  0xe6   :  { %1546 = vmatmul.mubr.msk.f32.gmra.mrb[2].mxu0 %vm188_vm1, %v1525_v29  ;;  %v628_v29 = vadd.s32 8, %v627_v27 }
  0xe7   :  { %1586 = vmatprep.mubr.msk.f32.mxu0 %vm1747_vm2, %v1748_v32 }
  0xe8   :  { %vm633_vm6 = vcmp.eq.s32.totalorder %v628_v29, %v1964_v28 }
 0x1b5   :  { %v1544_v36 = vpop.f32.mrb[0].mxu0 }
 0x1b6   :  { %v311_v37 = vadd.f32 %v1544_v36, %v298_v35  ;;  %v267_v38 = vpop.f32.mrb[1].mxu0 }
 0x1b7   :  { %v310_v39 = vadd.f32 %v293_v33, %v267_v38  ;;  %v629_v33 = vadd.s32 16, %v627_v27 }
 0x1b8   :  { %v315_v40 = vmax.f32 %v311_v37, 0.0 }
 0x1b9   :  { %v314_v42 = vmax.f32 %v310_v39, 0.0  ;;  %v1547_v43 = vpop.f32.mrb[2].mxu0  ;;  %vm634_vm8 = vcmp.eq.s32.totalorder %v629_v33, %v1964_v28  ;;  %vm637_vm9 = vcmp.eq.s32.totalorder %v629_v33, 16 }
 0x1ba   :  { %v313_v44 = vadd.f32 %v1547_v43, %v308_v41  ;;  %v277_v45 = vpop.f32.mrb[3].mxu0 }
 0x1bb   :  { %v312_v46 = vadd.f32 %v303_v34, %v277_v45  ;;  %v1640_v47 = vpack.c.bf16 %v315_v40, %v314_v42 }
 0x1bc   :  { %v317_v48 = vmax.f32 %v313_v44, 0.0 }
 0x1bd   :  { %v316_v49 = vmax.f32 %v312_v46, 0.0  ;;  %1641 = vmatpush3.bf16.msra.mxu1 %v1640_v47  ;;  %1659 = vmatpush3.bf16.msra.mxu0 %v1640_v47 }
 0x1be   :  { %1642 = vmatprep.subr.bf16.mxu1 %v1746_v31  ;;  %1660 = vmatprep.subr.bf16.mxu0 %v1746_v31 }
 0x1bf   :  { %v1643_v50 = vpack.c.bf16 %v317_v48, %v316_v49 }
 0x1c1   :  { %1644 = vmatpush3.bf16.msra.mxu1 %v1643_v50  ;;  %1662 = vmatpush3.bf16.msra.mxu0 %v1643_v50 }
 0x1c2   :  { %1645 = vmatprep.subr.bf16.mxu1 %v1746_v31  ;;  %1675 = vmatprep.subr.bf16.mxu0 %v1746_v31 }
 0x1c4   :  { %1557 = vmatmul.mubr.msk.f32.vlgmr.msra.gmra.mrb[0].mxu1 %vm318_vm3, %v51_v51  ;;  %1587 = vmatmul.mubr.msk.f32.vlgmr.msra.gmra.mrb[8].mxu0 %vm318_vm3, %v50_v52  ;;  %vm1088_vm3 = vcmp.eq.s32.totalorder %v1964_v28, 8 }
 0x1c5   :  { %1647 = vmatpush3.bf16.msra.mxu1 %v1812_v8  ;;  %1575 = vmatprep.mubr.msk.f32.mxu1 %vm1747_vm2, %v1748_v32  ;;  %v625_v8 = vld [vmem:[%s2446_s3 + $0x10] sm:$0xff] }
 0x1c6   :  { %1648 = vmatprep.subr.bf16.mxu1 %v1746_v31  ;;  %1614 = vmatprep.mubr.msk.f32.mxu0 %vm1747_vm2, %v1748_v32 }
 0x1c7   :  { %1677 = vmatpush3.bf16.msra.mxu0 %v1676_v4 }
 0x1c8   :  { %1612 = vmatprep.subr.mxu0 %v1748_v32 }
 0x1c9   :  { %1650 = vmatpush3.bf16.msra.mxu1 %v1820_v11  ;;  %v622_v11 = vld [vmem:[%s2445_s2 + $0x10] sm:$0x1] }
 0x1ca   :  { %1651 = vmatprep.subr.bf16.mxu1 %v1746_v31 }
 0x1cb   :  { %1613 = vmatpush3.msra.mxu0 %v625_v8 }
 0x1cc   :  { %1615 = vmatmul.mubr.msk.f32.vlgmr.msra.gmra.mrb[10].mxu0 %vm656_vm4, %v620_v9 }
 0x1cd   :  { %1653 = vmatpush3.bf16.msra.mxu1 %v1839_v16  ;;  %1617 = vmatprep.mubr.msk.f32.mxu0 %vm1747_vm2, %v1748_v32 }
 0x1ce   :  { %1654 = vmatprep.subr.bf16.mxu1 %v1746_v31 }
 0x1d0   :  { %1618 = vmatmul.mubr.msk.f32.gmra.mrb[12].mxu0 %vm656_vm4, %v621_v10 }
 0x1d1   :  { %1656 = vmatpush3.bf16.msra.mxu1 %v1854_v20  ;;  %1620 = vmatprep.mubr.msk.f32.mxu0 %vm1747_vm2, %v1748_v32 }
 0x1d2   :  { %1663 = vmatprep.subr.bf16.mxu1 %v1746_v31 }
 0x1d4   :  { %1621 = vmatmul.mubr.msk.f32.gmra.mrb[14].mxu0 %vm656_vm4, %v622_v11  ;;  %vm1130_vm4 = vcmp.eq.s32.totalorder %v1964_v28, 9 }
 0x297   :  { %v388_v58 = vpop.f32.mrb[0].mxu1  ;;  %v534_v61 = vpop.f32.mrb[8].mxu0 }
 0x298   :  { %v1558_v59 = vpop.f32.mrb[1].mxu1  ;;  %1576 = vmatmul.mubr.msk.f32.vlgmr.msra.gmra.mrb[2].mxu1 %vm188_vm1, %v388_v58  ;;  %v1588_v0 = vpop.f32.mrb[9].mxu0 }
 0x299   :  { %1665 = vmatpush3.bf16.msra.mxu1 %v1664_v55  ;;  %1605 = vmatprep.mubr.msk.f32.mxu1 %vm1747_vm2, %v1748_v32  ;;  %v638_v32 = vld [vmem:[%s2447_s4] sm:$0x1]  ;;  %vm1046_vm2 = vcmp.eq.s32.totalorder %v1964_v28, 7  ;;  %s1749_s4 = smov [#allocation4]  }
 0x29a   :  { %1666 = vmatprep.subr.bf16.mxu1 %v1746_v31  ;;  %s1430_s24 = sshll.u32 %s1749_s4, 4  ;;  %s1431_s24 = int_to_ptr.vmem [resolvable:$true] %s1430_s24 }
 0x29b   :  { %s1721_s25 = scalar_lea.vmem %s1431_s24, 16  ;;  %s1725_s26 = scalar_lea.vmem %s1431_s24, 32 }
 0x29c   :  { %p1722_p0 = scmp.ne.s32.totalorder %s1431_s24, %s1721_s25  ;;  %p1726_p1 = scmp.lt.s32.totalorder %s1431_s24, %s1431_s24 }
 0x29d   :  { %1668 = vmatpush3.bf16.msra.mxu1 %v1667_v60  ;;  %p1727_p2 = scmp.lt.s32.totalorder %s1725_s26, %s1721_s25 }
 0x29e   :  { %1669 = vmatprep.subr.bf16.mxu1 %v1746_v31 }
 0x29f   :  { %v732_v20 = vpop.f32.mrb[10].mxu0  ;;  %p1728_p3 = por %p1727_p2, %p1726_p1 }
 0x2a0   :  { %v1616_v21 = vpop.f32.mrb[11].mxu0 }
 0x2a1   :  { %1671 = vmatpush3.bf16.msra.mxu1 %v1670_v1  ;;  %p1729_p4 = pnand %p1728_p3, %p1722_p0 }
 0x2a2   :  { %1672 = vmatprep.subr.bf16.mxu1 %v1746_v31 }
 0x2a3   :  { %v737_v22 = vpop.f32.mrb[12].mxu0 }
 0x2a4   :  { %v1619_v23 = vpop.f32.mrb[13].mxu0 }
 0x2a5   :  { %1674 = vmatpush3.bf16.msra.mxu1 %v1673_v7 }
 0x2a7   :  { %v742_v24 = vpop.f32.mrb[14].mxu0 }
 0x2a8   :  { %v1622_v25 = vpop.f32.mrb[15].mxu0 }
 0x36b   :  { %v461_v12 = vpop.f32.mrb[2].mxu1 }
 0x36c   :  { %v535_v13 = vadd.f32 %v534_v61, %v461_v12  ;;  %v1577_v14 = vpop.f32.mrb[3].mxu1 }
 0x36e   :  { %v543_v16 = vadd.f32 %v541_v15, %v535_v13 }
 0x370   :  { %v544_v18 = vmax.f32 %v543_v16, 0.0 }
 0x372   :  { %v546_v19 = vmul.f32 %v545_v17, %v544_v18 }
 0x374   :  { %1606 = vmatmul.mubr.msk.f32.vlgmr.msra.gmra.mrb[4].mxu1 %vm188_vm1, %v546_v19  ;;  %vm1004_vm1 = vcmp.eq.s32.totalorder %v1964_v28, 6 }
 0x447   :  { %v616_v31 = vpop.f32.mrb[4].mxu1 }
 0x448   :  { %v617_v34 = vadd.f32 1e-05, %v616_v31  ;;  %v1607_v35 = vpop.f32.mrb[5].mxu1 }
 0x44a   :  { %v639_v36 = vmul.f32 %v638_v32, %v617_v34  ;;  %v652_v37 = vrot.slane %v617_v34, %v1966_v30 }
 0x44c   :  { %v644_v38 = vrot.slane %v639_v36, %v1966_v30  ;;  %v653_v39 = vsel %vm632_vm5, %v652_v37, 0.0  ;;  %v654_v40 = vsel %vm633_vm6, %v652_v37, 0.0  ;;  %vm1172_vm5 = vcmp.eq.s32.totalorder %v1964_v28, 10 }
 0x44d   :  { %v733_v41 = vadd.f32 %v732_v20, %v653_v39  ;;  %v738_v42 = vadd.f32 %v737_v22, %v654_v40  ;;  %vm1214_vm6 = vcmp.eq.s32.totalorder %v1964_v28, 11 }
 0x44e   :  { %v648_v43 = vsel %vm637_vm9, %v644_v38, 0.0  ;;  %vm1298_vm9 = vcmp.eq.s32.totalorder %v1964_v28, 13 }
 0x44f   :  { %747 = vst.msk [vmem:[#allocation2] sm:$0xff] %vm746_vm7, %v733_v41  ;;  %748 = vst.msk [vmem:[#allocation2 + $0x8] sm:$0xff] %vm746_vm7, %v738_v42  ;;  %v655_v44 = vsel %vm634_vm8, %v652_v37, %v648_v43  ;;  %v757_v45 = vsel %vm752_vm10, %v733_v41, 0.0  ;;  %v758_v1 = vsel %vm752_vm10, %v738_v42, 0.0  ;;  %vm1256_vm8 = vcmp.eq.s32.totalorder %v1964_v28, 12 }
 0x450   :  { %v1981_v46 = vadd.f32 %v742_v24, %v655_v44  ;;  %v760_v47 = vsel %vm746_vm7, %v757_v45, 0.0  ;;  %v763_v2 = vsel %vm746_vm7, %v758_v1, 0.0 }
 0x451   :  { %761 = vadd.xlane.f32.xlu0 %v760_v47 }
 0x456   :  { %v751_v48 = vld [vmem:[#allocation2] sm:$0x1] }
 0x457   :  { %v753_v49 = vsel %vm752_vm10, %v751_v48, 0.0  ;;  %v1991_v55 = vrot.slane %v751_v48, %v1966_v30 }
 0x458   :  { %v754_v50 = vsel %vm749_vm11, %v753_v49, 0.0 }
 0x459   :  { %755 = vadd.xlane.f32.xlu1 %v754_v50 }
 0x4de   :  { %v762_v54 = vpop.xlane.xlu0 %761 }
 0x4e6   :  { %v756_v51 = vpop.xlane.xlu1 %755 }
 0x4e7   :  { %1689 = vrcp.f32 %v756_v51 }
 0x4f1   :  { %v1690_v52 = vpop.eup %1689 }
 0x4f2   :  { %v1988_v53 = vrot.slane %v1690_v52, %v1966_v30 }
 0x4f4   :  { %v774_v56 = vmul.f32 %v1988_v53, %v762_v54 }
 0x4f6   :  { %v781_v57 = vmul.f32 %v1991_v55, %v774_v56 }
 0x4f8   :  { %v784_v58 = vsub.f32 %v733_v41, %v781_v57 }
 0x4fa   :  { %v787_v59 = vsel %vm752_vm10, %v774_v56, %v784_v58 }
 0x4fb   :  { %v799_v60 = vsel %vm794_vm12, %v787_v59, 0.0  ;;  %790 = vst.msk [vmem:[#allocation2] sm:$0xff] %vm746_vm7, %v787_v59 }
 0x4fc   :  { %v802_v61 = vsel %vm746_vm7, %v799_v60, 0.0 }
 0x4fd   :  { %803 = vadd.xlane.f32.xlu1 %v802_v61 }
 0x502   :  { %v793_v62 = vld [vmem:[#allocation2 + $0x1] sm:$0x1] }
 0x503   :  { %v795_v63 = vsel %vm794_vm12, %v793_v62, 0.0  ;;  %v2018_v13 = vrot.slane %v793_v62, %v1966_v30 }
 0x504   :  { %v796_v0 = vsel %vm749_vm11, %v795_v63, 0.0 }
 0x505   :  { %797 = vadd.xlane.f32.xlu0 %v796_v0 }
 0x509   :  { %764 = vadd.xlane.f32.xlu0 %v763_v2 }
 0x58a   :  { %v804_v11 = vpop.xlane.xlu1 %803 }
 0x592   :  { %v798_v3 = vpop.xlane.xlu0 %797 }
 0x593   :  { %1691 = vrcp.f32 %v798_v3 }
 0x596   :  { %v765_v4 = vpop.xlane.xlu0 %764 }
 0x597   :  { %v775_v5 = vmul.f32 %v1988_v53, %v765_v4 }
 0x599   :  { %v782_v6 = vmul.f32 %v1991_v55, %v775_v5 }
 0x59b   :  { %v785_v7 = vsub.f32 %v738_v42, %v782_v6  ;;  %v759_v42 = vsel %vm752_vm10, %v1981_v46, 0.0 }
 0x59c   :  { %v766_v43 = vsel %vm749_vm11, %v759_v42, 0.0 }
 0x59d   :  { %v1692_v8 = vpop.eup %1691  ;;  %v788_v9 = vsel %vm752_vm10, %v775_v5, %v785_v7 }
 0x59e   :  { %v2013_v10 = vrot.slane %v1692_v8, %v1966_v30  ;;  %791 = vst.msk [vmem:[#allocation2 + $0x8] sm:$0xff] %vm746_vm7, %v788_v9  ;;  %v800_v22 = vsel %vm794_vm12, %v788_v9, 0.0 }
 0x59f   :  { %v805_v23 = vsel %vm746_vm7, %v800_v22, 0.0 }
 0x5a0   :  { %v816_v12 = vmul.f32 %v2013_v10, %v804_v11 }
 0x5a2   :  { %v823_v14 = vmul.f32 %v2018_v13, %v816_v12 }
 0x5a4   :  { %v826_v15 = vsub.f32 %v787_v59, %v823_v14 }
 0x5a6   :  { %v829_v16 = vsel %vm794_vm12, %v816_v12, %v826_v15 }
 0x5a7   :  { %v841_v17 = vsel %vm836_vm13, %v829_v16, 0.0  ;;  %832 = vst.msk [vmem:[#allocation2] sm:$0xff] %vm746_vm7, %v829_v16 }
 0x5a8   :  { %v844_v18 = vsel %vm746_vm7, %v841_v17, 0.0 }
 0x5a9   :  { %845 = vadd.xlane.f32.xlu0 %v844_v18 }
 0x5ae   :  { %v835_v19 = vld [vmem:[#allocation2 + $0x2] sm:$0x1] }
 0x5af   :  { %v837_v20 = vsel %vm836_vm13, %v835_v19, 0.0  ;;  %v2044_v36 = vrot.slane %v835_v19, %v1966_v30 }
 0x5b0   :  { %v838_v21 = vsel %vm749_vm11, %v837_v20, 0.0 }
 0x5b1   :  { %839 = vadd.xlane.f32.xlu1 %v838_v21 }
 0x5b5   :  { %806 = vadd.xlane.f32.xlu1 %v805_v23 }
 0x636   :  { %v846_v34 = vpop.xlane.xlu0 %845 }
 0x63e   :  { %v840_v24 = vpop.xlane.xlu1 %839 }
 0x63f   :  { %1693 = vrcp.f32 %v840_v24 }
 0x642   :  { %v807_v25 = vpop.xlane.xlu1 %806 }
 0x643   :  { %v817_v26 = vmul.f32 %v2013_v10, %v807_v25 }
 0x645   :  { %v824_v27 = vmul.f32 %v2018_v13, %v817_v26 }
 0x647   :  { %v827_v29 = vsub.f32 %v788_v9, %v824_v27 }
 0x649   :  { %v1694_v31 = vpop.eup %1693  ;;  %v830_v32 = vsel %vm794_vm12, %v817_v26, %v827_v29 }
 0x64a   :  { %v2039_v33 = vrot.slane %v1694_v31, %v1966_v30  ;;  %833 = vst.msk [vmem:[#allocation2 + $0x8] sm:$0xff] %vm746_vm7, %v830_v32  ;;  %v842_v48 = vsel %vm836_vm13, %v830_v32, 0.0 }
 0x64b   :  { %v847_v49 = vsel %vm746_vm7, %v842_v48, 0.0 }
 0x64c   :  { %v858_v35 = vmul.f32 %v2039_v33, %v846_v34 }
 0x64e   :  { %v865_v37 = vmul.f32 %v2044_v36, %v858_v35 }
 0x650   :  { %v868_v38 = vsub.f32 %v829_v16, %v865_v37 }
 0x652   :  { %v871_v39 = vsel %vm836_vm13, %v858_v35, %v868_v38 }
 0x653   :  { %v883_v40 = vsel %vm878_vm14, %v871_v39, 0.0  ;;  %874 = vst.msk [vmem:[#allocation2] sm:$0xff] %vm746_vm7, %v871_v39 }
 0x654   :  { %v886_v41 = vsel %vm746_vm7, %v883_v40, 0.0 }
 0x655   :  { %887 = vadd.xlane.f32.xlu1 %v886_v41 }
 0x659   :  { %767 = vadd.xlane.f32.xlu1 %v766_v43 }
 0x65a   :  { %v877_v44 = vld [vmem:[#allocation2 + $0x3] sm:$0x1] }
 0x65b   :  { %v879_v45 = vsel %vm878_vm14, %v877_v44, 0.0  ;;  %v2081_v1 = vrot.slane %v877_v44, %v1966_v30 }
 0x65c   :  { %v880_v47 = vsel %vm749_vm11, %v879_v45, 0.0 }
 0x65d   :  { %881 = vadd.xlane.f32.xlu0 %v880_v47 }
 0x661   :  { %848 = vadd.xlane.f32.xlu0 %v847_v49 }
 0x6e2   :  { %v888_v50 = vpop.xlane.xlu1 %887 }
 0x6e6   :  { %v768_v51 = vpop.xlane.xlu1 %767 }
 0x6e7   :  { %v776_v52 = vmul.f32 %v1988_v53, %v768_v51 }
 0x6e9   :  { %v783_v54 = vmul.f32 %v1991_v55, %v776_v52 }
 0x6ea   :  { %v882_v56 = vpop.xlane.xlu0 %881 }
 0x6eb   :  { %v786_v57 = vsub.f32 %v1981_v46, %v783_v54  ;;  %1695 = vrcp.f32 %v882_v56 }
 0x6ed   :  { %v789_v58 = vsel %vm752_vm10, %v776_v52, %v786_v57  ;;  %vm1340_vm10 = vcmp.eq.s32.totalorder %v1964_v28, 14 }
 0x6ee   :  { %v849_v59 = vpop.xlane.xlu0 %848  ;;  %v801_v3 = vsel %vm794_vm12, %v789_v58, 0.0 }
 0x6ef   :  { %v859_v60 = vmul.f32 %v2039_v33, %v849_v59  ;;  %v808_v5 = vsel %vm749_vm11, %v801_v3, 0.0 }
 0x6f1   :  { %v866_v61 = vmul.f32 %v2044_v36, %v859_v60 }
 0x6f3   :  { %v869_v62 = vsub.f32 %v830_v32, %v866_v61 }
 0x6f5   :  { %v1696_v63 = vpop.eup %1695  ;;  %v872_v0 = vsel %vm836_vm13, %v859_v60, %v869_v62 }
 0x6f6   :  { %v2074_v53 = vrot.slane %v1696_v63, %v1966_v30  ;;  %v884_v46 = vsel %vm878_vm14, %v872_v0, 0.0  ;;  %875 = vst.msk [vmem:[#allocation2 + $0x8] sm:$0xff] %vm746_vm7, %v872_v0 }
 0x6f7   :  { %v889_v55 = vsel %vm746_vm7, %v884_v46, 0.0 }
 0x6f8   :  { %v900_v2 = vmul.f32 %v2074_v53, %v888_v50  ;;  %890 = vadd.xlane.f32.xlu0 %v889_v55 }
 0x6fa   :  { %v907_v4 = vmul.f32 %v2081_v1, %v900_v2 }
 0x6fc   :  { %v910_v6 = vsub.f32 %v871_v39, %v907_v4  ;;  %809 = vadd.xlane.f32.xlu0 %v808_v5 }
 0x6fe   :  { %v913_v7 = vsel %vm878_vm14, %v900_v2, %v910_v6 }
 0x6ff   :  { %916 = vst.msk [vmem:[#allocation2] sm:$0xff] %vm746_vm7, %v913_v7  ;;  %v925_v12 = vsel %vm920_vm15, %v913_v7, 0.0 }
 0x700   :  { %v928_v14 = vsel %vm746_vm7, %v925_v12, 0.0 }
 0x706   :  { %v919_v8 = vld [vmem:[#allocation2 + $0x4] sm:$0x1] }
 0x707   :  { %v921_v9 = vsel %vm920_vm15, %v919_v8, 0.0  ;;  %v2117_v34 = vrot.slane %v919_v8, %v1966_v30 }
 0x708   :  { %v922_v11 = vsel %vm749_vm11, %v921_v9, 0.0 }
 0x709   :  { %923 = vadd.xlane.f32.xlu1 %v922_v11 }
 0x70d   :  { %929 = vadd.xlane.f32.xlu1 %v928_v14 }
 0x785   :  { %v891_v15 = vpop.xlane.xlu0 %890 }
 0x786   :  { %v901_v16 = vmul.f32 %v2074_v53, %v891_v15 }
 0x788   :  { %v908_v17 = vmul.f32 %v2081_v1, %v901_v16 }
 0x789   :  { %v810_v18 = vpop.xlane.xlu0 %809 }
 0x78a   :  { %v911_v19 = vsub.f32 %v872_v0, %v908_v17  ;;  %v818_v20 = vmul.f32 %v2013_v10, %v810_v18 }
 0x78c   :  { %v825_v21 = vmul.f32 %v2018_v13, %v818_v20  ;;  %v914_v22 = vsel %vm878_vm14, %v901_v16, %v911_v19 }
 0x78d   :  { %917 = vst.msk [vmem:[#allocation2 + $0x8] sm:$0xff] %vm746_vm7, %v914_v22  ;;  %v926_v23 = vsel %vm920_vm15, %v914_v22, 0.0 }
 0x78e   :  { %v828_v24 = vsub.f32 %v789_v58, %v825_v21  ;;  %v931_v25 = vsel %vm746_vm7, %v926_v23, 0.0 }
 0x78f   :  { %932 = vadd.xlane.f32.xlu0 %v931_v25 }
 0x790   :  { %v831_v26 = vsel %vm794_vm12, %v818_v20, %v828_v24  ;;  %vm1382_vm12 = vcmp.eq.s32.totalorder %v1964_v28, 15 }
 0x791   :  { %v843_v10 = vsel %vm836_vm13, %v831_v26, 0.0 }
 0x792   :  { %v850_v13 = vsel %vm749_vm11, %v843_v10, 0.0 }
 0x793   :  { %851 = vadd.xlane.f32.xlu1 %v850_v13 }
 0x796   :  { %v924_v27 = vpop.xlane.xlu1 %923 }
 0x797   :  { %1697 = vrcp.f32 %v924_v27 }
 0x79a   :  { %v930_v32 = vpop.xlane.xlu1 %929 }
 0x7a1   :  { %v1698_v29 = vpop.eup %1697 }
 0x7a2   :  { %v2114_v31 = vrot.slane %v1698_v29, %v1966_v30 }
 0x7a4   :  { %v942_v35 = vmul.f32 %v2114_v31, %v930_v32 }
 0x7a6   :  { %v949_v37 = vmul.f32 %v2117_v34, %v942_v35 }
 0x7a8   :  { %v952_v38 = vsub.f32 %v913_v7, %v949_v37 }
 0x7aa   :  { %v955_v39 = vsel %vm920_vm15, %v942_v35, %v952_v38 }
 0x7ab   :  { %v967_v40 = vsel %vm962_vm0, %v955_v39, 0.0  ;;  %958 = vst.msk [vmem:[#allocation2] sm:$0xff] %vm746_vm7, %v955_v39 }
 0x7ac   :  { %v970_v41 = vsel %vm746_vm7, %v967_v40, 0.0 }
 0x7ad   :  { %971 = vadd.xlane.f32.xlu1 %v970_v41 }
 0x7b2   :  { %v961_v42 = vld [vmem:[#allocation2 + $0x5] sm:$0x1] }
 0x7b3   :  { %v963_v43 = vsel %vm962_vm0, %v961_v42, 0.0  ;;  %v2151_v46 = vrot.slane %v961_v42, %v1966_v30 }
 0x7b4   :  { %v964_v44 = vsel %vm749_vm11, %v963_v43, 0.0 }
 0x7b5   :  { %965 = vadd.xlane.f32.xlu0 %v964_v44 }
 0x81c   :  { %v933_v45 = vpop.xlane.xlu0 %932 }
 0x81d   :  { %v943_v47 = vmul.f32 %v2114_v31, %v933_v45 }
 0x81f   :  { %v950_v48 = vmul.f32 %v2117_v34, %v943_v47 }
 0x820   :  { %v852_v49 = vpop.xlane.xlu1 %851 }
 0x821   :  { %v953_v50 = vsub.f32 %v914_v22, %v950_v48  ;;  %v860_v51 = vmul.f32 %v2039_v33, %v852_v49 }
 0x823   :  { %v867_v52 = vmul.f32 %v2044_v36, %v860_v51  ;;  %v956_v54 = vsel %vm920_vm15, %v943_v47, %v953_v50 }
 0x824   :  { %959 = vst.msk [vmem:[#allocation2 + $0x8] sm:$0xff] %vm746_vm7, %v956_v54  ;;  %v968_v56 = vsel %vm962_vm0, %v956_v54, 0.0 }
 0x825   :  { %v870_v57 = vsub.f32 %v831_v26, %v867_v52  ;;  %v973_v58 = vsel %vm746_vm7, %v968_v56, 0.0 }
 0x826   :  { %974 = vadd.xlane.f32.xlu0 %v973_v58 }
 0x827   :  { %v873_v59 = vsel %vm836_vm13, %v860_v51, %v870_v57 }
 0x828   :  { %v885_v33 = vsel %vm878_vm14, %v873_v59, 0.0 }
 0x829   :  { %v892_v36 = vsel %vm749_vm11, %v885_v33, 0.0 }
 0x82a   :  { %893 = vadd.xlane.f32.xlu1 %v892_v36 }
 0x83a   :  { %v972_v63 = vpop.xlane.xlu1 %971 }
 0x842   :  { %v966_v60 = vpop.xlane.xlu0 %965 }
 0x843   :  { %1699 = vrcp.f32 %v966_v60 }
 0x84d   :  { %v1700_v61 = vpop.eup %1699 }
 0x84e   :  { %v2147_v62 = vrot.slane %v1700_v61, %v1966_v30 }
 0x850   :  { %v984_v0 = vmul.f32 %v2147_v62, %v972_v63 }
 0x852   :  { %v991_v55 = vmul.f32 %v2151_v46, %v984_v0 }
 0x854   :  { %v994_v2 = vsub.f32 %v955_v39, %v991_v55 }
 0x856   :  { %v997_v3 = vsel %vm962_vm0, %v984_v0, %v994_v2 }
 0x857   :  { %v1009_v4 = vsel %vm1004_vm1, %v997_v3, 0.0  ;;  %1000 = vst.msk [vmem:[#allocation2] sm:$0xff] %vm746_vm7, %v997_v3 }
 0x858   :  { %v1012_v5 = vsel %vm746_vm7, %v1009_v4, 0.0 }
 0x859   :  { %1013 = vadd.xlane.f32.xlu1 %v1012_v5 }
 0x85e   :  { %v1003_v6 = vld [vmem:[#allocation2 + $0x6] sm:$0x1] }
 0x85f   :  { %v1005_v7 = vsel %vm1004_vm1, %v1003_v6, 0.0  ;;  %v1032_v10 = vrot.slane %v1003_v6, %v1966_v30 }
 0x860   :  { %v1006_v8 = vsel %vm749_vm11, %v1005_v7, 0.0 }
 0x861   :  { %1007 = vadd.xlane.f32.xlu0 %v1006_v8 }
 0x8b3   :  { %v975_v9 = vpop.xlane.xlu0 %974 }
 0x8b4   :  { %v985_v11 = vmul.f32 %v2147_v62, %v975_v9 }
 0x8b6   :  { %v992_v12 = vmul.f32 %v2151_v46, %v985_v11 }
 0x8b7   :  { %v894_v14 = vpop.xlane.xlu1 %893 }
 0x8b8   :  { %v995_v15 = vsub.f32 %v956_v54, %v992_v12  ;;  %v902_v16 = vmul.f32 %v2074_v53, %v894_v14 }
 0x8ba   :  { %v909_v17 = vmul.f32 %v2081_v1, %v902_v16  ;;  %v998_v18 = vsel %vm962_vm0, %v985_v11, %v995_v15 }
 0x8bb   :  { %1001 = vst.msk [vmem:[#allocation2 + $0x8] sm:$0xff] %vm746_vm7, %v998_v18  ;;  %v1010_v19 = vsel %vm1004_vm1, %v998_v18, 0.0 }
 0x8bc   :  { %v912_v20 = vsub.f32 %v873_v59, %v909_v17  ;;  %v1015_v21 = vsel %vm746_vm7, %v1010_v19, 0.0 }
 0x8bd   :  { %1016 = vadd.xlane.f32.xlu0 %v1015_v21 }
 0x8be   :  { %v915_v22 = vsel %vm878_vm14, %v902_v16, %v912_v20 }
 0x8bf   :  { %v927_v53 = vsel %vm920_vm15, %v915_v22, 0.0 }
 0x8c0   :  { %v934_v1 = vsel %vm749_vm11, %v927_v53, 0.0 }
 0x8c1   :  { %935 = vadd.xlane.f32.xlu1 %v934_v1 }
 0x8e6   :  { %v1014_v26 = vpop.xlane.xlu1 %1013 }
 0x8ee   :  { %v1008_v23 = vpop.xlane.xlu0 %1007 }
 0x8ef   :  { %1701 = vrcp.f32 %v1008_v23 }
 0x8f9   :  { %v1702_v24 = vpop.eup %1701 }
 0x8fa   :  { %v1025_v25 = vrot.slane %v1702_v24, %v1966_v30 }
 0x8fc   :  { %v1026_v13 = vmul.f32 %v1025_v25, %v1014_v26 }
 0x8fe   :  { %v1033_v27 = vmul.f32 %v1032_v10, %v1026_v13 }
 0x900   :  { %v1036_v29 = vsub.f32 %v997_v3, %v1033_v27 }
 0x902   :  { %v2183_v32 = vsel %vm1004_vm1, %v1026_v13, %v1036_v29 }
 0x903   :  { %1042 = vst.msk [vmem:[#allocation2] sm:$0xff] %vm746_vm7, %v2183_v32  ;;  %v1051_v8 = vsel %vm1046_vm2, %v2183_v32, 0.0 }
 0x904   :  { %v1054_v9 = vsel %vm746_vm7, %v1051_v8, 0.0 }
 0x90a   :  { %v1045_v35 = vld [vmem:[#allocation2 + $0x7] sm:$0x1] }
 0x90b   :  { %v1047_v37 = vsel %vm1046_vm2, %v1045_v35, 0.0  ;;  %v2208_v58 = vrot.slane %v1045_v35, %v1966_v30 }
 0x90c   :  { %v1048_v38 = vsel %vm749_vm11, %v1047_v37, 0.0 }
 0x90d   :  { %1049 = vadd.xlane.f32.xlu0 %v1048_v38 }
 0x94a   :  { %v1017_v39 = vpop.xlane.xlu0 %1016 }
 0x94b   :  { %v1027_v40 = vmul.f32 %v1025_v25, %v1017_v39 }
 0x94d   :  { %v1034_v41 = vmul.f32 %v1032_v10, %v1027_v40 }
 0x94e   :  { %v936_v42 = vpop.xlane.xlu1 %935 }
 0x94f   :  { %v1037_v43 = vsub.f32 %v998_v18, %v1034_v41  ;;  %v944_v44 = vmul.f32 %v2114_v31, %v936_v42 }
 0x951   :  { %v951_v45 = vmul.f32 %v2117_v34, %v944_v44  ;;  %v1040_v47 = vsel %vm1004_vm1, %v1027_v40, %v1037_v43 }
 0x952   :  { %1043 = vst.msk [vmem:[#allocation2 + $0x8] sm:$0xff] %vm746_vm7, %v1040_v47  ;;  %v1052_v48 = vsel %vm1046_vm2, %v1040_v47, 0.0 }
 0x953   :  { %v954_v49 = vsub.f32 %v915_v22, %v951_v45  ;;  %v1057_v50 = vsel %vm746_vm7, %v1052_v48, 0.0 }
 0x954   :  { %1058 = vadd.xlane.f32.xlu1 %v1057_v50 }
 0x955   :  { %v957_v51 = vsel %vm920_vm15, %v944_v44, %v954_v49 }
 0x956   :  { %v969_v31 = vsel %vm962_vm0, %v957_v51, 0.0 }
 0x957   :  { %v976_v34 = vsel %vm749_vm11, %v969_v31, 0.0 }
 0x958   :  { %977 = vadd.xlane.f32.xlu0 %v976_v34 }
 0x99a   :  { %v1050_v52 = vpop.xlane.xlu0 %1049 }
 0x99b   :  { %1703 = vrcp.f32 %v1050_v52 }
 0x9a5   :  { %v1704_v54 = vpop.eup %1703 }
 0x9a6   :  { %v2205_v56 = vrot.slane %v1704_v54, %v1966_v30 }
 0x9e1   :  { %v1059_v57 = vpop.xlane.xlu1 %1058 }
 0x9e2   :  { %v1069_v59 = vmul.f32 %v2205_v56, %v1059_v57 }
 0x9e4   :  { %v1076_v33 = vmul.f32 %v2208_v58, %v1069_v59 }
 0x9e5   :  { %v978_v36 = vpop.xlane.xlu0 %977 }
 0x9e6   :  { %v1079_v60 = vsub.f32 %v1040_v47, %v1076_v33  ;;  %v986_v61 = vmul.f32 %v2147_v62, %v978_v36 }
 0x9e8   :  { %v993_v63 = vmul.f32 %v2151_v46, %v986_v61  ;;  %v1082_v0 = vsel %vm1046_vm2, %v1069_v59, %v1079_v60 }
 0x9e9   :  { %1085 = vst.msk [vmem:[#allocation2 + $0x8] sm:$0xff] %vm746_vm7, %v1082_v0  ;;  %v1094_v62 = vsel %vm1088_vm3, %v1082_v0, 0.0 }
 0x9ea   :  { %v996_v55 = vsub.f32 %v957_v51, %v993_v63  ;;  %v1099_v6 = vsel %vm746_vm7, %v1094_v62, 0.0 }
 0x9ec   :  { %v999_v2 = vsel %vm962_vm0, %v986_v61, %v996_v55 }
 0x9ed   :  { %v1011_v3 = vsel %vm1004_vm1, %v999_v2, 0.0 }
 0x9ee   :  { %v1018_v4 = vsel %vm749_vm11, %v1011_v3, 0.0 }
 0x9ef   :  { %1019 = vadd.xlane.f32.xlu1 %v1018_v4 }
 0x9f0   :  { %v1087_v46 = vld [vmem:[#allocation2 + $0x8] sm:$0x1] }
 0x9f1   :  { %v1089_v5 = vsel %vm1088_vm3, %v1087_v46, 0.0  ;;  %v1116_v26 = vrot.slane %v1087_v46, %v1966_v30 }
 0x9f2   :  { %v1090_v7 = vsel %vm749_vm11, %v1089_v5, 0.0 }
 0x9f3   :  { %1100 = vadd.xlane.f32.xlu1 %v1099_v6  ;;  %1091 = vadd.xlane.f32.xlu0 %v1090_v7 }
 0x9f7   :  { %1055 = vadd.xlane.f32.xlu1 %v1054_v9 }
 0xa7c   :  { %v1020_v11 = vpop.xlane.xlu1 %1019 }
 0xa7d   :  { %v1028_v12 = vmul.f32 %v1025_v25, %v1020_v11 }
 0xa7f   :  { %v1035_v14 = vmul.f32 %v1032_v10, %v1028_v12 }
 0xa80   :  { %v1092_v15 = vpop.xlane.xlu0 %1091  ;;  %v1101_v16 = vpop.xlane.xlu1 %1100 }
 0xa81   :  { %v1038_v17 = vsub.f32 %v999_v2, %v1035_v14  ;;  %1705 = vrcp.f32 %v1092_v15 }
 0xa83   :  { %v1041_v18 = vsel %vm1004_vm1, %v1028_v12, %v1038_v17 }
 0xa84   :  { %v1056_v19 = vpop.xlane.xlu1 %1055  ;;  %v1053_v20 = vsel %vm1046_vm2, %v1041_v18, 0.0 }
 0xa85   :  { %v1068_v21 = vmul.f32 %v2205_v56, %v1056_v19  ;;  %v1060_v22 = vsel %vm749_vm11, %v1053_v20, 0.0 }
 0xa86   :  { %1061 = vadd.xlane.f32.xlu0 %v1060_v22 }
 0xa87   :  { %v1075_v53 = vmul.f32 %v2208_v58, %v1068_v21 }
 0xa89   :  { %v1078_v1 = vsub.f32 %v2183_v32, %v1075_v53 }
 0xa8b   :  { %v1706_v23 = vpop.eup %1705  ;;  %v1081_v24 = vsel %vm1046_vm2, %v1068_v21, %v1078_v1 }
 0xa8c   :  { %v1109_v25 = vrot.slane %v1706_v23, %v1966_v30  ;;  %1084 = vst.msk [vmem:[#allocation2] sm:$0xff] %vm746_vm7, %v1081_v24  ;;  %v1093_v37 = vsel %vm1088_vm3, %v1081_v24, 0.0 }
 0xa8d   :  { %v1096_v38 = vsel %vm746_vm7, %v1093_v37, 0.0 }
 0xa8e   :  { %v1111_v10 = vmul.f32 %v1109_v25, %v1101_v16 }
 0xa90   :  { %v1118_v13 = vmul.f32 %v1116_v26, %v1111_v10 }
 0xa92   :  { %v1121_v27 = vsub.f32 %v1082_v0, %v1118_v13 }
 0xa94   :  { %v1124_v29 = vsel %vm1088_vm3, %v1111_v10, %v1121_v27 }
 0xa95   :  { %v1136_v32 = vsel %vm1130_vm4, %v1124_v29, 0.0  ;;  %1127 = vst.msk [vmem:[#allocation2 + $0x8] sm:$0xff] %vm746_vm7, %v1124_v29 }
 0xa96   :  { %v1141_v35 = vsel %vm746_vm7, %v1136_v32, 0.0 }
 0xa97   :  { %1142 = vadd.xlane.f32.xlu1 %v1141_v35 }
 0xa9b   :  { %1097 = vadd.xlane.f32.xlu1 %v1096_v38 }
 0xa9c   :  { %v1129_v39 = vld [vmem:[#allocation2 + $0x9] sm:$0x1] }
 0xa9d   :  { %v1131_v40 = vsel %vm1130_vm4, %v1129_v39, 0.0  ;;  %v1158_v33 = vrot.slane %v1129_v39, %v1966_v30 }
 0xa9e   :  { %v1132_v41 = vsel %vm749_vm11, %v1131_v40, 0.0 }
 0xa9f   :  { %1133 = vadd.xlane.f32.xlu0 %v1132_v41 }
 0xb13   :  { %v1062_v42 = vpop.xlane.xlu0 %1061 }
 0xb14   :  { %v1070_v43 = vmul.f32 %v2205_v56, %v1062_v42 }
 0xb16   :  { %v1077_v44 = vmul.f32 %v2208_v58, %v1070_v43 }
 0xb18   :  { %v1080_v45 = vsub.f32 %v1041_v18, %v1077_v44 }
 0xb1a   :  { %v1083_v47 = vsel %vm1046_vm2, %v1070_v43, %v1080_v45 }
 0xb1b   :  { %v1095_v48 = vsel %vm1088_vm3, %v1083_v47, 0.0 }
 0xb1c   :  { %v1102_v49 = vsel %vm749_vm11, %v1095_v48, 0.0 }
 0xb1d   :  { %1103 = vadd.xlane.f32.xlu0 %v1102_v49 }
 0xb24   :  { %v1143_v50 = vpop.xlane.xlu1 %1142 }
 0xb28   :  { %v1098_v51 = vpop.xlane.xlu1 %1097 }
 0xb29   :  { %v1110_v31 = vmul.f32 %v1109_v25, %v1098_v51 }
 0xb2b   :  { %v1117_v34 = vmul.f32 %v1116_v26, %v1110_v31 }
 0xb2c   :  { %v1134_v52 = vpop.xlane.xlu0 %1133 }
 0xb2d   :  { %v1120_v54 = vsub.f32 %v1081_v24, %v1117_v34  ;;  %1707 = vrcp.f32 %v1134_v52 }
 0xb2f   :  { %v1123_v56 = vsel %vm1088_vm3, %v1110_v31, %v1120_v54 }
 0xb30   :  { %1126 = vst.msk [vmem:[#allocation2] sm:$0xff] %vm746_vm7, %v1123_v56  ;;  %v1135_v55 = vsel %vm1130_vm4, %v1123_v56, 0.0 }
 0xb31   :  { %v1138_v2 = vsel %vm746_vm7, %v1135_v55, 0.0 }
 0xb37   :  { %v1708_v57 = vpop.eup %1707 }
 0xb38   :  { %v1151_v58 = vrot.slane %v1708_v57, %v1966_v30 }
 0xb3a   :  { %v1153_v59 = vmul.f32 %v1151_v58, %v1143_v50 }
 0xb3c   :  { %v1160_v36 = vmul.f32 %v1158_v33, %v1153_v59 }
 0xb3e   :  { %v1163_v60 = vsub.f32 %v1124_v29, %v1160_v36 }
 0xb40   :  { %v1166_v61 = vsel %vm1130_vm4, %v1153_v59, %v1163_v60 }
 0xb41   :  { %v1178_v63 = vsel %vm1172_vm5, %v1166_v61, 0.0  ;;  %1169 = vst.msk [vmem:[#allocation2 + $0x8] sm:$0xff] %vm746_vm7, %v1166_v61 }
 0xb42   :  { %v1183_v0 = vsel %vm746_vm7, %v1178_v63, 0.0 }
 0xb43   :  { %1184 = vadd.xlane.f32.xlu1 %v1183_v0 }
 0xb47   :  { %1139 = vadd.xlane.f32.xlu1 %v1138_v2 }
 0xb48   :  { %v1171_v3 = vld [vmem:[#allocation2 + $0xa] sm:$0x1] }
 0xb49   :  { %v1173_v4 = vsel %vm1172_vm5, %v1171_v3, 0.0  ;;  %v1200_v53 = vrot.slane %v1171_v3, %v1966_v30 }
 0xb4a   :  { %v1174_v62 = vsel %vm749_vm11, %v1173_v4, 0.0 }
 0xb4b   :  { %1175 = vadd.xlane.f32.xlu0 %v1174_v62 }
 0xbaa   :  { %v1104_v46 = vpop.xlane.xlu0 %1103 }
 0xbab   :  { %v1112_v5 = vmul.f32 %v1109_v25, %v1104_v46 }
 0xbad   :  { %v1119_v6 = vmul.f32 %v1116_v26, %v1112_v5 }
 0xbaf   :  { %v1122_v7 = vsub.f32 %v1083_v47, %v1119_v6 }
 0xbb1   :  { %v1125_v8 = vsel %vm1088_vm3, %v1112_v5, %v1122_v7 }
 0xbb2   :  { %v1137_v9 = vsel %vm1130_vm4, %v1125_v8, 0.0 }
 0xbb3   :  { %v1144_v11 = vsel %vm749_vm11, %v1137_v9, 0.0 }
 0xbb4   :  { %1145 = vadd.xlane.f32.xlu0 %v1144_v11 }
 0xbd0   :  { %v1185_v12 = vpop.xlane.xlu1 %1184 }
 0xbd4   :  { %v1140_v14 = vpop.xlane.xlu1 %1139 }
 0xbd5   :  { %v1152_v15 = vmul.f32 %v1151_v58, %v1140_v14 }
 0xbd7   :  { %v1159_v16 = vmul.f32 %v1158_v33, %v1152_v15 }
 0xbd8   :  { %v1176_v17 = vpop.xlane.xlu0 %1175 }
 0xbd9   :  { %v1162_v18 = vsub.f32 %v1123_v56, %v1159_v16  ;;  %1709 = vrcp.f32 %v1176_v17 }
 0xbdb   :  { %v1165_v19 = vsel %vm1130_vm4, %v1152_v15, %v1162_v18 }
 0xbdc   :  { %1168 = vst.msk [vmem:[#allocation2] sm:$0xff] %vm746_vm7, %v1165_v19  ;;  %v1177_v10 = vsel %vm1172_vm5, %v1165_v19, 0.0 }
 0xbdd   :  { %v1180_v13 = vsel %vm746_vm7, %v1177_v10, 0.0 }
 0xbe3   :  { %v1710_v20 = vpop.eup %1709 }
 0xbe4   :  { %v1193_v21 = vrot.slane %v1710_v20, %v1966_v30 }
 0xbe6   :  { %v1195_v22 = vmul.f32 %v1193_v21, %v1185_v12 }
 0xbe8   :  { %v1202_v1 = vmul.f32 %v1200_v53, %v1195_v22 }
 0xbea   :  { %v1205_v23 = vsub.f32 %v1166_v61, %v1202_v1 }
 0xbec   :  { %v1208_v24 = vsel %vm1172_vm5, %v1195_v22, %v1205_v23 }
 0xbed   :  { %v1220_v25 = vsel %vm1214_vm6, %v1208_v24, 0.0  ;;  %1211 = vst.msk [vmem:[#allocation2 + $0x8] sm:$0xff] %vm746_vm7, %v1208_v24 }
 0xbee   :  { %v1225_v26 = vsel %vm746_vm7, %v1220_v25, 0.0 }
 0xbef   :  { %1226 = vadd.xlane.f32.xlu1 %v1225_v26 }
 0xbf3   :  { %1181 = vadd.xlane.f32.xlu1 %v1180_v13 }
 0xbf4   :  { %v1213_v27 = vld [vmem:[#allocation2 + $0xb] sm:$0x1] }
 0xbf5   :  { %v1215_v29 = vsel %vm1214_vm6, %v1213_v27, 0.0  ;;  %v1242_v56 = vrot.slane %v1213_v27, %v1966_v30 }
 0xbf6   :  { %v1216_v32 = vsel %vm749_vm11, %v1215_v29, 0.0 }
 0xbf7   :  { %1217 = vadd.xlane.f32.xlu0 %v1216_v32 }
 0xc41   :  { %v1146_v35 = vpop.xlane.xlu0 %1145 }
 0xc42   :  { %v1154_v37 = vmul.f32 %v1151_v58, %v1146_v35 }
 0xc44   :  { %v1161_v38 = vmul.f32 %v1158_v33, %v1154_v37 }
 0xc46   :  { %v1164_v39 = vsub.f32 %v1125_v8, %v1161_v38 }
 0xc48   :  { %v1167_v40 = vsel %vm1130_vm4, %v1154_v37, %v1164_v39 }
 0xc49   :  { %v1179_v41 = vsel %vm1172_vm5, %v1167_v40, 0.0 }
 0xc4a   :  { %v1186_v42 = vsel %vm749_vm11, %v1179_v41, 0.0 }
 0xc4b   :  { %1187 = vadd.xlane.f32.xlu0 %v1186_v42 }
 0xc7c   :  { %v1227_v43 = vpop.xlane.xlu1 %1226 }
 0xc80   :  { %v1182_v44 = vpop.xlane.xlu1 %1181 }
 0xc81   :  { %v1194_v45 = vmul.f32 %v1193_v21, %v1182_v44 }
 0xc83   :  { %v1201_v47 = vmul.f32 %v1200_v53, %v1194_v45 }
 0xc84   :  { %v1218_v48 = vpop.xlane.xlu0 %1217 }
 0xc85   :  { %v1204_v49 = vsub.f32 %v1165_v19, %v1201_v47  ;;  %1711 = vrcp.f32 %v1218_v48 }
 0xc87   :  { %v1207_v50 = vsel %vm1172_vm5, %v1194_v45, %v1204_v49 }
 0xc88   :  { %v1219_v51 = vsel %vm1214_vm6, %v1207_v50, 0.0  ;;  %1210 = vst.msk [vmem:[#allocation2] sm:$0xff] %vm746_vm7, %v1207_v50 }
 0xc89   :  { %v1222_v31 = vsel %vm746_vm7, %v1219_v51, 0.0 }
 0xc8a   :  { %1223 = vadd.xlane.f32.xlu1 %v1222_v31 }
 0xc8f   :  { %v1712_v34 = vpop.eup %1711 }
 0xc90   :  { %v1235_v52 = vrot.slane %v1712_v34, %v1966_v30 }
 0xc92   :  { %v1237_v54 = vmul.f32 %v1235_v52, %v1227_v43 }
 0xc94   :  { %v1244_v57 = vmul.f32 %v1242_v56, %v1237_v54 }
 0xc96   :  { %v1247_v58 = vsub.f32 %v1208_v24, %v1244_v57 }
 0xc98   :  { %v1250_v59 = vsel %vm1214_vm6, %v1237_v54, %v1247_v58 }
 0xc99   :  { %1253 = vst.msk [vmem:[#allocation2 + $0x8] sm:$0xff] %vm746_vm7, %v1250_v59  ;;  %v1262_v33 = vsel %vm1256_vm8, %v1250_v59, 0.0 }
 0xc9a   :  { %v1267_v36 = vsel %vm746_vm7, %v1262_v33, 0.0 }
 0xc9b   :  { %1268 = vadd.xlane.f32.xlu1 %v1267_v36 }
 0xca0   :  { %v1255_v2 = vld [vmem:[#allocation2 + $0xc] sm:$0x1] }
 0xca1   :  { %v1257_v62 = vsel %vm1256_vm8, %v1255_v2, 0.0  ;;  %v1284_v24 = vrot.slane %v1255_v2, %v1966_v30 }
 0xca2   :  { %v1258_v46 = vsel %vm749_vm11, %v1257_v62, 0.0 }
 0xcd8   :  { %v1188_v60 = vpop.xlane.xlu0 %1187 }
 0xcd9   :  { %v1196_v61 = vmul.f32 %v1193_v21, %v1188_v60 }
 0xcdb   :  { %v1203_v63 = vmul.f32 %v1200_v53, %v1196_v61 }
 0xcdd   :  { %v1206_v0 = vsub.f32 %v1167_v40, %v1203_v63 }
 0xcdf   :  { %v1209_v55 = vsel %vm1172_vm5, %v1196_v61, %v1206_v0 }
 0xce0   :  { %v1221_v3 = vsel %vm1214_vm6, %v1209_v55, 0.0 }
 0xce1   :  { %v1228_v4 = vsel %vm749_vm11, %v1221_v3, 0.0 }
 0xce2   :  { %1229 = vadd.xlane.f32.xlu0 %v1228_v4 }
 0xce6   :  { %1259 = vadd.xlane.f32.xlu0 %v1258_v46 }
 0xd17   :  { %v1224_v5 = vpop.xlane.xlu1 %1223 }
 0xd18   :  { %v1236_v6 = vmul.f32 %v1235_v52, %v1224_v5 }
 0xd1a   :  { %v1243_v7 = vmul.f32 %v1242_v56, %v1236_v6 }
 0xd1c   :  { %v1246_v8 = vsub.f32 %v1207_v50, %v1243_v7 }
 0xd1e   :  { %v1249_v9 = vsel %vm1214_vm6, %v1236_v6, %v1246_v8 }
 0xd1f   :  { %v1261_v11 = vsel %vm1256_vm8, %v1249_v9, 0.0  ;;  %1252 = vst.msk [vmem:[#allocation2] sm:$0xff] %vm746_vm7, %v1249_v9 }
 0xd20   :  { %v1264_v12 = vsel %vm746_vm7, %v1261_v11, 0.0 }
 0xd21   :  { %1265 = vadd.xlane.f32.xlu1 %v1264_v12 }
 0xd28   :  { %v1269_v1 = vpop.xlane.xlu1 %1268 }
 0xd6f   :  { %v1230_v14 = vpop.xlane.xlu0 %1229 }
 0xd70   :  { %v1238_v15 = vmul.f32 %v1235_v52, %v1230_v14 }
 0xd72   :  { %v1245_v16 = vmul.f32 %v1242_v56, %v1238_v15 }
 0xd73   :  { %v1260_v17 = vpop.xlane.xlu0 %1259 }
 0xd74   :  { %v1248_v18 = vsub.f32 %v1209_v55, %v1245_v16  ;;  %1713 = vrcp.f32 %v1260_v17 }
 0xd76   :  { %v1251_v19 = vsel %vm1214_vm6, %v1238_v15, %v1248_v18 }
 0xd77   :  { %v1263_v20 = vsel %vm1256_vm8, %v1251_v19, 0.0 }
 0xd78   :  { %v1270_v21 = vsel %vm749_vm11, %v1263_v20, 0.0 }
 0xd79   :  { %1271 = vadd.xlane.f32.xlu0 %v1270_v21 }
 0xd7e   :  { %v1714_v22 = vpop.eup %1713 }
 0xd7f   :  { %v1277_v53 = vrot.slane %v1714_v22, %v1966_v30 }
 0xd81   :  { %v1279_v23 = vmul.f32 %v1277_v53, %v1269_v1 }
 0xd83   :  { %v1286_v25 = vmul.f32 %v1284_v24, %v1279_v23 }
 0xd85   :  { %v1289_v26 = vsub.f32 %v1250_v59, %v1286_v25 }
 0xd87   :  { %v1292_v10 = vsel %vm1256_vm8, %v1279_v23, %v1289_v26 }
 0xd88   :  { %v1304_v13 = vsel %vm1298_vm9, %v1292_v10, 0.0  ;;  %1295 = vst.msk [vmem:[#allocation2 + $0x8] sm:$0xff] %vm746_vm7, %v1292_v10 }
 0xd89   :  { %v1309_v27 = vsel %vm746_vm7, %v1304_v13, 0.0 }
 0xd8a   :  { %1310 = vadd.xlane.f32.xlu1 %v1309_v27 }
 0xd8f   :  { %v1297_v29 = vld [vmem:[#allocation2 + $0xd] sm:$0x1] }
 0xd90   :  { %v1299_v32 = vsel %vm1298_vm9, %v1297_v29, 0.0  ;;  %v1326_v56 = vrot.slane %v1297_v29, %v1966_v30 }
 0xd91   :  { %v1300_v35 = vsel %vm749_vm11, %v1299_v32, 0.0 }
 0xd92   :  { %1301 = vadd.xlane.f32.xlu0 %v1300_v35 }
 0xdae   :  { %v1266_v37 = vpop.xlane.xlu1 %1265 }
 0xdaf   :  { %v1278_v38 = vmul.f32 %v1277_v53, %v1266_v37 }
 0xdb1   :  { %v1285_v39 = vmul.f32 %v1284_v24, %v1278_v38 }
 0xdb3   :  { %v1288_v40 = vsub.f32 %v1249_v9, %v1285_v39 }
 0xdb5   :  { %v1291_v41 = vsel %vm1256_vm8, %v1278_v38, %v1288_v40 }
 0xdb6   :  { %v1303_v42 = vsel %vm1298_vm9, %v1291_v41, 0.0  ;;  %1294 = vst.msk [vmem:[#allocation2] sm:$0xff] %vm746_vm7, %v1291_v41 }
 0xdb7   :  { %v1306_v43 = vsel %vm746_vm7, %v1303_v42, 0.0 }
 0xdb8   :  { %1307 = vadd.xlane.f32.xlu1 %v1306_v43 }
 0xe06   :  { %v1272_v44 = vpop.xlane.xlu0 %1271 }
 0xe07   :  { %v1280_v45 = vmul.f32 %v1277_v53, %v1272_v44 }
 0xe09   :  { %v1287_v47 = vmul.f32 %v1284_v24, %v1280_v45 }
 0xe0b   :  { %v1290_v48 = vsub.f32 %v1251_v19, %v1287_v47 }
 0xe0d   :  { %v1293_v49 = vsel %vm1256_vm8, %v1280_v45, %v1290_v48 }
 0xe0e   :  { %v1305_v50 = vsel %vm1298_vm9, %v1293_v49, 0.0 }
 0xe0f   :  { %v1312_v51 = vsel %vm749_vm11, %v1305_v50, 0.0 }
 0xe10   :  { %1313 = vadd.xlane.f32.xlu0 %v1312_v51 }
 0xe17   :  { %v1311_v54 = vpop.xlane.xlu1 %1310 }
 0xe1f   :  { %v1302_v31 = vpop.xlane.xlu0 %1301 }
 0xe20   :  { %1715 = vrcp.f32 %v1302_v31 }
 0xe2a   :  { %v1716_v34 = vpop.eup %1715 }
 0xe2b   :  { %v1319_v52 = vrot.slane %v1716_v34, %v1966_v30 }
 0xe2d   :  { %v1321_v57 = vmul.f32 %v1319_v52, %v1311_v54 }
 0xe2f   :  { %v1328_v58 = vmul.f32 %v1326_v56, %v1321_v57 }
 0xe31   :  { %v1331_v59 = vsub.f32 %v1292_v10, %v1328_v58 }
 0xe33   :  { %v1334_v33 = vsel %vm1298_vm9, %v1321_v57, %v1331_v59 }
 0xe34   :  { %v1346_v36 = vsel %vm1340_vm10, %v1334_v33, 0.0  ;;  %1337 = vst.msk [vmem:[#allocation2 + $0x8] sm:$0xff] %vm746_vm7, %v1334_v33 }
 0xe35   :  { %v1351_v60 = vsel %vm746_vm7, %v1346_v36, 0.0 }
 0xe36   :  { %1352 = vadd.xlane.f32.xlu1 %v1351_v60 }
 0xe3b   :  { %v1339_v61 = vld [vmem:[#allocation2 + $0xe] sm:$0x1] }
 0xe3c   :  { %v1341_v63 = vsel %vm1340_vm10, %v1339_v61, 0.0  ;;  %v1368_v20 = vrot.slane %v1339_v61, %v1966_v30 }
 0xe3d   :  { %v1342_v0 = vsel %vm749_vm11, %v1341_v63, 0.0 }
 0xe3e   :  { %1343 = vadd.xlane.f32.xlu0 %v1342_v0 }
 0xe45   :  { %v1308_v55 = vpop.xlane.xlu1 %1307 }
 0xe46   :  { %v1320_v2 = vmul.f32 %v1319_v52, %v1308_v55 }
 0xe48   :  { %v1327_v3 = vmul.f32 %v1326_v56, %v1320_v2 }
 0xe4a   :  { %v1330_v4 = vsub.f32 %v1291_v41, %v1327_v3 }
 0xe4c   :  { %v1333_v62 = vsel %vm1298_vm9, %v1320_v2, %v1330_v4 }
 0xe4d   :  { %v1345_v46 = vsel %vm1340_vm10, %v1333_v62, 0.0  ;;  %1336 = vst.msk [vmem:[#allocation2] sm:$0xff] %vm746_vm7, %v1333_v62 }
 0xe4e   :  { %v1348_v5 = vsel %vm746_vm7, %v1345_v46, 0.0 }
 0xe4f   :  { %1349 = vadd.xlane.f32.xlu1 %v1348_v5 }
 0xe9d   :  { %v1314_v6 = vpop.xlane.xlu0 %1313 }
 0xe9e   :  { %v1322_v7 = vmul.f32 %v1319_v52, %v1314_v6 }
 0xea0   :  { %v1329_v8 = vmul.f32 %v1326_v56, %v1322_v7 }
 0xea2   :  { %v1332_v9 = vsub.f32 %v1293_v49, %v1329_v8 }
 0xea4   :  { %v1335_v11 = vsel %vm1298_vm9, %v1322_v7, %v1332_v9 }
 0xea5   :  { %v1347_v12 = vsel %vm1340_vm10, %v1335_v11, 0.0 }
 0xea6   :  { %v1354_v14 = vsel %vm749_vm11, %v1347_v12, 0.0 }
 0xea7   :  { %1355 = vadd.xlane.f32.xlu0 %v1354_v14 }
 0xec3   :  { %v1353_v18 = vpop.xlane.xlu1 %1352 }
 0xecb   :  { %v1344_v15 = vpop.xlane.xlu0 %1343 }
 0xecc   :  { %1717 = vrcp.f32 %v1344_v15 }
 0xed6   :  { %v1718_v16 = vpop.eup %1717 }
 0xed7   :  { %v1361_v17 = vrot.slane %v1718_v16, %v1966_v30 }
 0xed9   :  { %v1363_v19 = vmul.f32 %v1361_v17, %v1353_v18 }
 0xedb   :  { %v1370_v21 = vmul.f32 %v1368_v20, %v1363_v19 }
 0xedc   :  { %v1350_v22 = vpop.xlane.xlu1 %1349 }
 0xedd   :  { %v1373_v53 = vsub.f32 %v1334_v33, %v1370_v21  ;;  %v1362_v1 = vmul.f32 %v1361_v17, %v1350_v22 }
 0xedf   :  { %v2396_v23 = vsel %vm1340_vm10, %v1363_v19, %v1373_v53  ;;  %v1369_v24 = vmul.f32 %v1368_v20, %v1362_v1 }
 0xee0   :  { %1379 = vst.msk [vmem:[#allocation2 + $0x8] sm:$0xff] %vm746_vm7, %v2396_v23  ;;  %v1388_v43 = vsel %vm1382_vm12, %v2396_v23, 0.0 }
 0xee1   :  { %v1372_v25 = vsub.f32 %v1333_v62, %v1369_v24  ;;  %v1393_v44 = vsel %vm746_vm7, %v1388_v43, 0.0 }
 0xee3   :  { %v1375_v26 = vsel %vm1340_vm10, %v1362_v1, %v1372_v25 }
 0xee4   :  { %1378 = vst.msk [vmem:[#allocation2] sm:$0xff] %vm746_vm7, %v1375_v26  ;;  %v1387_v29 = vsel %vm1382_vm12, %v1375_v26, 0.0 }
 0xee5   :  { %v1390_v32 = vsel %vm746_vm7, %v1387_v29, 0.0 }
 0xee7   :  { %v1381_v10 = vld [vmem:[#allocation2 + $0xf] sm:$0x1] }
 0xee8   :  { %v1383_v13 = vsel %vm1382_vm12, %v1381_v10, 0.0  ;;  %v1410_v50 = vrot.slane %v1381_v10, %v1966_v30 }
 0xee9   :  { %v1384_v27 = vsel %vm749_vm11, %v1383_v13, 0.0 }
 0xeea   :  { %1385 = vadd.xlane.f32.xlu0 %v1384_v27 }
 0xeee   :  { %1391 = vadd.xlane.f32.xlu0 %v1390_v32 }
 0xf34   :  { %v1356_v35 = vpop.xlane.xlu0 %1355 }
 0xf35   :  { %v1364_v37 = vmul.f32 %v1361_v17, %v1356_v35 }
 0xf37   :  { %v1371_v38 = vmul.f32 %v1368_v20, %v1364_v37 }
 0xf39   :  { %v1374_v39 = vsub.f32 %v1335_v11, %v1371_v38 }
 0xf3b   :  { %v1377_v40 = vsel %vm1340_vm10, %v1364_v37, %v1374_v39 }
 0xf3c   :  { %v1389_v41 = vsel %vm1382_vm12, %v1377_v40, 0.0 }
 0xf3d   :  { %v1396_v42 = vsel %vm749_vm11, %v1389_v41, 0.0 }
 0xf3e   :  { %1397 = vadd.xlane.f32.xlu1 %v1396_v42 }
 0xf42   :  { %1394 = vadd.xlane.f32.xlu1 %v1393_v44 }
 0xf77   :  { %v1386_v45 = vpop.xlane.xlu0 %1385 }
 0xf78   :  { %1719 = vrcp.f32 %v1386_v45 }
 0xf7b   :  { %v1392_v49 = vpop.xlane.xlu0 %1391 }
 0xf82   :  { %v1720_v47 = vpop.eup %1719 }
 0xf83   :  { %v1403_v48 = vrot.slane %v1720_v47, %v1966_v30 }
 0xf85   :  { %v1404_v51 = vmul.f32 %v1403_v48, %v1392_v49 }
 0xf87   :  { %v1411_v31 = vmul.f32 %v1410_v50, %v1404_v51 }
 0xf89   :  { %v1414_v34 = vsub.f32 %v1375_v26, %v1411_v31 }
 0xf8b   :  { %v1417_v52 = vsel %vm1382_vm12, %v1404_v51, %v1414_v34 }
 0xf8c   :  { %1420 = vst.msk [vmem:[#allocation2] sm:$0xff] %vm746_vm7, %v1417_v52 }
 0xfcb   :  { %v1398_v54 = vpop.xlane.xlu1 %1397 }
 0xfcc   :  { %v1406_v56 = vmul.f32 %v1403_v48, %v1398_v54 }
 0xfce   :  { %v1413_v57 = vmul.f32 %v1410_v50, %v1406_v56 }
 0xfcf   :  { %v1395_v58 = vpop.xlane.xlu1 %1394 }
 0xfd0   :  { %v1416_v59 = vsub.f32 %v1377_v40, %v1413_v57  ;;  %v1405_v33 = vmul.f32 %v1403_v48, %v1395_v58 }
 0xfd2   :  { %v1412_v36 = vmul.f32 %v1410_v50, %v1405_v33  ;;  %v1419_v30 = vsel %vm1382_vm12, %v1406_v56, %v1416_v59 }
 0xfd3   :  { %1423 = vst.msk [vmem:[#allocation4] sm:$0x1] %vm749_vm11, %v1419_v30 }
 0xfd4   :  { %v1415_v60 = vsub.f32 %v2396_v23, %v1412_v36 }
 0xfd5   :  { %1732 = shalt.err (!%p1729_p4)
}
 0xfd6   :  { %s1733_s1 = scalar_lea.hbm %s2449_s6, 16 }
 0xfd7   :  { %p1734_p5 = scmp.ne.s32.totalorder %s2449_s6, %s1733_s1  ;;  %p1737_p6 = scmp.lt.u32.totalorder %s1733_s1, %s2449_s6 }
 0xfd9   :  { %p1739_p7 = pnand %p1737_p6, %p1734_p5 }
 0xfdb   :  { %1742 = shalt.err (!%p1739_p7)
}
 0xfdc   :  { %1433 = dma.vmem_to_hbm [thread:$0]  %s1431_s24, 16, %s2449_s6, [#allocation5]   ;;  %v1418_v61 = vsel %vm1382_vm12, %v1405_v33, %v1415_v60 }
 0xfdd   :  { %1421 = vst.msk [vmem:[#allocation2 + $0x8] sm:$0xff] %vm746_vm7, %v1418_v61 }
 0xfde   :  { %1743 = dma.done.wait [#allocation5], 16  }
 0xfdf   :  { %1744 = vsyncadd [#allocation5], 4294967280 }
 0xfe0   :  { %1437 = vsyncpa [#allocation5], 1 }

</bundles_post_ra>
